<compile_context>
chip_gen: v7x
topology: tpu7x:2x2x1
jax: 0.10.0
libtpu: 0.0.40
codegen_flags: <defaults>
</compile_context>

<pallas_src>
import functools

import jax
import jax.numpy as jnp
from jax.experimental import pallas as pl
from jax.experimental.pallas import tpu as pltpu


# ----------------------------- fused decoder-layer kernel -----------------------------

def _decoder_layer_kernel(x_ref,
                          ln1_g, ln1_b, ln2_g, ln2_b, ln3_g, ln3_b,
                          sa_wq, sa_wk, sa_wv, sa_wo, sa_bo,
                          ca_wq, ca_wk, ca_wv, ca_wo, ca_bo,
                          rw, rb, w1, b1, w2, b2,
                          o_ref, x3_sc, wexp_sc,
                          *, num_heads, num_experts, active_experts):
    f32, bf16 = jnp.float32, jnp.bfloat16
    S, E = x_ref.shape
    hd = E // num_heads
    e_idx = pl.program_id(1)          # expert index (inner, "arbitrary" axis)

    def layer_norm(x, g_ref, b_ref):
        mu = jnp.mean(x, axis=-1, keepdims=True)
        var = jnp.mean((x - mu) ** 2, axis=-1, keepdims=True)
        return (x - mu) * jax.lax.rsqrt(var + 1e-5) * g_ref[...] + b_ref[...]

    def mha(xq, xkv, wq_ref, wk_ref, wv_ref, wo_ref, bo_ref):
        # Reference Attention uses bias=False for Q/K/V; only out_linear has a bias.
        scale = 1.0 / (hd ** 0.5)
        xq_b, xkv_b = xq.astype(bf16), xkv.astype(bf16)        # hoisted casts
        # Head-batched projections: three (S,E)@(E,E) bf16 matmuls.
        q = jnp.dot(xq_b, wq_ref[...], preferred_element_type=f32).astype(bf16)
        k = jnp.dot(xkv_b, wk_ref[...], preferred_element_type=f32).astype(bf16)
        v = jnp.dot(xkv_b, wv_ref[...], preferred_element_type=f32).astype(bf16)
        wo = wo_ref[...]
        out = jnp.zeros((S, E), f32)
        for h in range(num_heads):
            lo, hi = h * hd, (h + 1) * hd
            # q @ k^T without an explicit transpose: contract last dims of both
            # operands (bf16 MXU inputs, f32 accumulation).
            s = jax.lax.dot_general(
                q[:, lo:hi], k[:, lo:hi],
                dimension_numbers=(((1,), (1,)), ((), ())),
                preferred_element_type=f32) * scale            # (S, S) f32
            s = s - jnp.max(s, axis=-1, keepdims=True)
            p = jnp.exp(s)
            p = p * pl.reciprocal(jnp.sum(p, axis=-1, keepdims=True), approx=True)
            ctx = jnp.dot(p.astype(bf16), v[:, lo:hi],
                          preferred_element_type=f32)           # (S, hd)
            # concat(head contexts) @ Wo == sum_h ctx_h @ Wo[h*hd:(h+1)*hd, :]
            out = out + jnp.dot(ctx.astype(bf16), wo[lo:hi, :],
                                preferred_element_type=f32)
        return out + bo_ref[...]

    # ---- expert step 0: attention block + router; stash state in scratch ----
    @pl.when(e_idx == 0)
    def _():
        x0 = x_ref[...]                       # (S, E) layer input == "memory"
        # x = norm1(x); x = x + SelfAttn(q=x, kv=x)
        x1 = layer_norm(x0, ln1_g, ln1_b)
        x1 = x1 + mha(x1, x1, sa_wq, sa_wk, sa_wv, sa_wo, sa_bo)
        # x = norm2(x); x = x + CrossAttn(q=x, kv=memory)
        x2 = layer_norm(x1, ln2_g, ln2_b)
        x2 = x2 + mha(x2, x0, ca_wq, ca_wk, ca_wv, ca_wo, ca_bo)
        # x = norm3(x)
        x3 = layer_norm(x2, ln3_g, ln3_b)

        # TopKRouter (f32): Linear + ReLU, iterative argmax == torch.topk
        # (exact ties resolve to the lowest expert index), masked softmax.
        scores = jnp.maximum(
            jnp.dot(x3, rw[...], preferred_element_type=f32) + rb[...], 0.0)
        lane = jax.lax.broadcasted_iota(jnp.int32, (S, num_experts), 1)
        work, mask = scores, jnp.zeros_like(scores)
        for _ in range(active_experts):
            row_max = jnp.max(work, axis=-1, keepdims=True)
            cand = jnp.where(work == row_max, lane, num_experts)
            chosen = jnp.min(cand, axis=-1, keepdims=True)
            onehot = (lane == chosen).astype(f32)
            mask = mask + onehot
            work = jnp.where(onehot > 0, -jnp.inf, work)
        masked = jnp.where(mask == 0, -jnp.inf, scores)
        masked = masked - jnp.max(masked, axis=-1, keepdims=True)
        ex = jnp.exp(masked)
        router_weight = ex * pl.reciprocal(jnp.sum(ex, axis=-1, keepdims=True),
                                           approx=True)
        x3_sc[...] = x3
        wexp_sc[...] = router_weight * mask     # (S, NE) per-token expert weights
        o_ref[...] = x3.astype(o_ref.dtype)     # seed residual accumulator

    # ---- every expert step: one expert's FFN, weighted accumulate ----------
    # w1/b1/w2/b2 BlockSpecs deliver only THIS expert's slabs, so VMEM holds a
    # single (E,4E)+(4E,E) pair at a time and their DMA overlaps prior compute.
    x3 = x3_sc[...]
    lane = jax.lax.broadcasted_iota(jnp.int32, (S, num_experts), 1)
    w_e = jnp.sum(jnp.where(lane == e_idx, wexp_sc[...], 0.0),
                  axis=-1, keepdims=True)       # (S, 1): this expert's weight
    h = jnp.maximum(
        jnp.dot(x3.astype(bf16), w1[...], preferred_element_type=f32) + b1[...],
        0.0)                                    # (S, 4E)
    y = jnp.dot(h.astype(bf16), w2[...], preferred_element_type=f32) + b2[0]
    o_ref[...] = o_ref[...] + (w_e * y).astype(o_ref.dtype)


def _out_proj_kernel(x_ref, w_ref, b_ref, o_ref):
    # Lane-dense (vocab padded to a multiple of 128) final projection tile.
    o_ref[...] = (jnp.dot(x_ref[...].astype(jnp.bfloat16), w_ref[...],
                          preferred_element_type=jnp.float32) + b_ref[...])


# ----------------------------- Pallas wrappers -----------------------------

_CONST_KEYS = ("ln1_g", "ln1_b", "ln2_g", "ln2_b", "ln3_g", "ln3_b",
               "sa_wq", "sa_wk", "sa_wv", "sa_wo", "sa_bo",
               "ca_wq", "ca_wk", "ca_wv", "ca_wo", "ca_bo",
               "rw", "rb")


def _vmem_limit(byte_terms):
    need = int(sum(byte_terms))
    # 2x headroom, never below the 32 MiB default, never above 100 MiB.
    return int(min(100 << 20, max(32 << 20, 2 * need)))


def _const_spec(shape):
    # Constant-index weight: whole block, single-buffered (no wasted 2nd buffer).
    n = len(shape)
    return pl.BlockSpec(shape, lambda b, e: (0,) * n,
                        pipeline_mode=pl.Buffered(1))


def fused_decoder_layer(x2d, lp, *, seq, n_heads, num_experts, active_experts):
    BS, E = x2d.shape
    nb = BS // seq
    H4 = 4 * E

    const_ws = [lp[k] for k in _CONST_KEYS]
    w1, b1, w2, b2 = lp["w1"], lp["b1"], lp["w2"], lp["b2"]

    in_specs = ([pl.BlockSpec((seq, E), lambda b, e: (b, 0))]
                + [_const_spec(w.shape) for w in const_ws]
                + [pl.BlockSpec((E, H4), lambda b, e: (0, e)),      # w1 slab
                   pl.BlockSpec((1, H4), lambda b, e: (0, e)),      # b1 slab
                   pl.BlockSpec((H4, E), lambda b, e: (e, 0)),      # w2 slab
                   pl.BlockSpec((1, 1, E), lambda b, e: (e, 0, 0))])  # b2 slab

    vmem_limit = _vmem_limit([
        4 * (seq * E * 4),                                          # x in + out, 2 bufs
        sum(w.size * w.dtype.itemsize for w in const_ws),           # single-buffered
        2 * sum(w.size * w.dtype.itemsize // num_experts
                for w in (w1, b1, w2, b2)),                         # expert slabs, 2 bufs
        4 * seq * (E + num_experts),                                # scratch
    ])

    kernel = functools.partial(_decoder_layer_kernel, num_heads=n_heads,
                               num_experts=num_experts,
                               active_experts=active_experts)
    return pl.pallas_call(
        kernel,
        out_shape=jax.ShapeDtypeStruct((BS, E), x2d.dtype),
        grid=(nb, num_experts),
        in_specs=in_specs,
        out_specs=pl.BlockSpec((seq, E), lambda b, e: (b, 0)),
        scratch_shapes=[pltpu.VMEM((seq, E), jnp.float32),           # x3
                        pltpu.VMEM((seq, num_experts), jnp.float32)],  # router weights
        compiler_params=pltpu.CompilerParams(
            dimension_semantics=("parallel", "arbitrary"),
            vmem_limit_bytes=vmem_limit),
    )(x2d, *const_ws, w1, b1, w2, b2)


def out_projection(x2d, w, b, *, seq):
    BS, E = x2d.shape
    Vp = w.shape[-1]                       # multiple of 128
    tv = next(c for c in (1024, 512, 256, 128) if Vp % c == 0)
    nb, nv = BS // seq, Vp // tv
    vmem_limit = _vmem_limit([
        2 * seq * E * 4,                   # x block
        2 * E * tv * w.dtype.itemsize,     # weight tile
        2 * tv * 4,                        # bias tile
        2 * seq * tv * 4,                  # output tile
    ])
    return pl.pallas_call(
        _out_proj_kernel,
        out_shape=jax.ShapeDtypeStruct((BS, Vp), jnp.float32),
        grid=(nb, nv),
        in_specs=[pl.BlockSpec((seq, E), lambda bb, v: (bb, 0)),
                  pl.BlockSpec((E, tv), lambda bb, v: (0, v)),
                  pl.BlockSpec((1, tv), lambda bb, v: (0, v))],
        out_specs=pl.BlockSpec((seq, tv), lambda bb, v: (bb, v)),
        compiler_params=pltpu.CompilerParams(
            dimension_semantics=("parallel", "parallel"),
            vmem_limit_bytes=vmem_limit),
    )(x2d, w, b)


# ----------------------------- model (glue) -----------------------------

def positional_encoding(seq_len, embed_dim):
    pos = jnp.arange(seq_len, dtype=jnp.float32)[:, None]
    div = jnp.exp(jnp.arange(0, embed_dim, 2, dtype=jnp.float32)
                  * (-(jnp.log(10000.0) / embed_dim)))
    pe = jnp.zeros((seq_len, embed_dim), dtype=jnp.float32)
    pe = pe.at[:, 0::2].set(jnp.sin(pos * div))
    pe = pe.at[:, 1::2].set(jnp.cos(pos * div))
    return pe[None, :, :]                                   # (1, S, E)


def init_params(key, *, vocab_size, seq_len, embed_dim, n_layers, n_heads,
                num_experts):
    E = embed_dim
    H4 = 4 * E
    vpad = ((vocab_size + 127) // 128) * 128                # lane-dense out width

    def nrm(k, shape, dtype=jnp.float32):
        return (0.02 * jax.random.normal(k, shape, jnp.float32)).astype(dtype)

    keys = iter(jax.random.split(key, 3 + n_layers * 16))
    out_w = jnp.pad(nrm(next(keys), (E, vocab_size)),
                    ((0, 0), (0, vpad - vocab_size))).astype(jnp.bfloat16)
    out_b = jnp.pad(nrm(next(keys), (1, vocab_size)),
                    ((0, 0), (0, vpad - vocab_size)))
    params = {
        "embedding": nrm(next(keys), (vocab_size, E)),
        "pe": positional_encoding(seq_len, E),
        "out_w": out_w,
        "out_b": out_b,
        "layers": [],
    }
    for _ in range(n_layers):
        lp = {}
        for nm in ("ln1", "ln2", "ln3"):
            lp[nm + "_g"] = jnp.ones((1, E), jnp.float32)
            lp[nm + "_b"] = jnp.zeros((1, E), jnp.float32)
        for nm in ("sa", "ca"):
            # Per-head Q/K/V weights stored concatenated as (E, E) bf16.
            lp[nm + "_wq"] = nrm(next(keys), (E, E), jnp.bfloat16)
            lp[nm + "_wk"] = nrm(next(keys), (E, E), jnp.bfloat16)
            lp[nm + "_wv"] = nrm(next(keys), (E, E), jnp.bfloat16)
            lp[nm + "_wo"] = nrm(next(keys), (E, E), jnp.bfloat16)
            lp[nm + "_bo"] = nrm(next(keys), (1, E))
        # Router weights (f32) + expert weights stored flattened over the
        # expert axis so per-expert slabs are lane-dense contiguous blocks.
        lp["rw"] = nrm(next(keys), (E, num_experts))
        lp["rb"] = nrm(next(keys), (1, num_experts))
        lp["w1"] = nrm(next(keys), (E, num_experts * H4), jnp.bfloat16)
        lp["b1"] = nrm(next(keys), (1, num_experts * H4))
        lp["w2"] = nrm(next(keys), (num_experts * H4, E), jnp.bfloat16)
        lp["b2"] = nrm(next(keys), (num_experts, 1, E))
        params["layers"].append(lp)
    return params


def sparse_moe_transformer_decoder(params, tokens, *, vocab_size, n_heads,
                                   num_experts, active_experts):
    B, S = tokens.shape
    E = params["embedding"].shape[-1]
    # Embedding + positional encoding (glue, plain JAX).
    x = jnp.take(params["embedding"], tokens, axis=0) + params["pe"]   # (B, S, E)
    x = x.reshape(B * S, E)
    for lp in params["layers"]:
        # decoder calls layer(x, x, ...): memory == the layer's input (in-kernel)
        x = fused_decoder_layer(x, lp, seq=S, n_heads=n_heads,
                                num_experts=num_experts,
                                active_experts=active_experts)
    logits = out_projection(x, params["out_w"], params["out_b"], seq=S)
    return logits[:, :vocab_size].reshape(B, S, vocab_size)


# ----------------------------- main -----------------------------

if __name__ == "__main__":
    VOCAB, SEQ, EMB = 64, 8, 32
    N_LAYERS, N_HEADS = 2, 4
    NUM_EXPERTS, ACTIVE_EXPERTS = 4, 2
    BATCH = 2

    root = jax.random.PRNGKey(0)
    k_params, k_tok = jax.random.split(root)
    params = init_params(k_params, vocab_size=VOCAB, seq_len=SEQ,
                         embed_dim=EMB, n_layers=N_LAYERS, n_heads=N_HEADS,
                         num_experts=NUM_EXPERTS)
    tokens = jax.random.randint(k_tok, (BATCH, SEQ), 0, VOCAB, dtype=jnp.int32)

    fwd = jax.jit(functools.partial(sparse_moe_transformer_decoder,
                                    vocab_size=VOCAB,
                                    n_heads=N_HEADS,
                                    num_experts=NUM_EXPERTS,
                                    active_experts=ACTIVE_EXPERTS))
    logits = fwd(params, tokens)
    jax.block_until_ready(logits)
    assert logits.shape == (BATCH, SEQ, VOCAB)
    print("KERNEL_OK")
</pallas_src>

<mosaic_0001>
module attributes {stable_mosaic.version = 11 : i64} {
  func.func @_out_proj_kernel(%arg0: i32, %arg1: i32, %arg2: memref<8x32xf32, #tpu.memory_space<vmem>>, %arg3: memref<32x128xbf16, #tpu.memory_space<vmem>>, %arg4: memref<1x128xf32, #tpu.memory_space<vmem>>, %arg5: memref<8x128xf32, #tpu.memory_space<vmem>>) attributes {dimension_semantics = [#tpu.dimension_semantics<parallel>, #tpu.dimension_semantics<parallel>], iteration_bounds = array<i64: 2, 1>, scalar_prefetch = 0 : i64, scratch_operands = 0 : i64, tpu.core_type = #tpu.core_type<tc>, window_params = [{transform_indices = @transform_0, window_bounds = array<i64: 8, 32>}, {transform_indices = @transform_1, window_bounds = array<i64: 32, 128>}, {transform_indices = @transform_2, window_bounds = array<i64: 1, 128>}, {transform_indices = @transform_3, window_bounds = array<i64: 8, 128>}]} {
    %c0 = arith.constant 0 : index
    %c0_0 = arith.constant 0 : index
    %0 = vector.load %arg2[%c0, %c0_0] : memref<8x32xf32, #tpu.memory_space<vmem>>, vector<8x32xf32>
    %1 = arith.truncf %0 : vector<8x32xf32> to vector<8x32xbf16>
    %c0_1 = arith.constant 0 : index
    %c0_2 = arith.constant 0 : index
    %2 = vector.load %arg3[%c0_1, %c0_2] : memref<32x128xbf16, #tpu.memory_space<vmem>>, vector<32x128xbf16>
    %cst = arith.constant dense<0.000000e+00> : vector<8x128xf32>
    %3 = tpu.matmul %1, %2, %cst {dimension_numbers = #tpu.dot_dimension_numbers<[1], [0], [0], [1], [0, 0, 1, 1], [], []>} : vector<8x32xbf16>, vector<32x128xbf16>, vector<8x128xf32> -> vector<8x128xf32>
    %c0_3 = arith.constant 0 : index
    %c0_4 = arith.constant 0 : index
    %4 = vector.load %arg4[%c0_3, %c0_4] : memref<1x128xf32, #tpu.memory_space<vmem>>, vector<1x128xf32>
    %5 = vector.broadcast %4 : vector<1x128xf32> to vector<8x128xf32>
    %6 = arith.addf %3, %5 : vector<8x128xf32>
    %c0_5 = arith.constant 0 : index
    %c0_6 = arith.constant 0 : index
    %7 = vector.load %arg5[%c0_5, %c0_6] : memref<8x128xf32, #tpu.memory_space<vmem>>, vector<8x128xf32>
    tpu.vector_store %arg5[%c0_5, %c0_6], %6 {strides = array<i32>} : memref<8x128xf32, #tpu.memory_space<vmem>>, vector<8x128xf32>,
    return
  }
  func.func @transform_0(%arg0: i32, %arg1: i32) -> (i32, i32) {
    %c0_i32 = arith.constant 0 : i32
    %c0_i32_0 = arith.constant 0 : i32
    return %arg0, %c0_i32 : i32, i32
  }
  func.func @transform_1(%arg0: i32, %arg1: i32) -> (i32, i32) {
    %c0_i32 = arith.constant 0 : i32
    %c0_i32_0 = arith.constant 0 : i32
    return %c0_i32, %arg1 : i32, i32
  }
  func.func @transform_2(%arg0: i32, %arg1: i32) -> (i32, i32) {
    %c0_i32 = arith.constant 0 : i32
    %c0_i32_0 = arith.constant 0 : i32
    return %c0_i32, %arg1 : i32, i32
  }
  func.func @transform_3(%arg0: i32, %arg1: i32) -> (i32, i32) {
    %c0_i32 = arith.constant 0 : i32
    return %arg0, %arg1 : i32, i32
  }
}

module attributes {stable_mosaic.version = 11 : i64} {
  func.func @_decoder_layer_kernel(%arg0: i32, %arg1: i32, %arg2: memref<8x32xf32, #tpu.memory_space<vmem>>, %arg3: memref<1x32xf32, #tpu.memory_space<vmem>>, %arg4: memref<1x32xf32, #tpu.memory_space<vmem>>, %arg5: memref<1x32xf32, #tpu.memory_space<vmem>>, %arg6: memref<1x32xf32, #tpu.memory_space<vmem>>, %arg7: memref<1x32xf32, #tpu.memory_space<vmem>>, %arg8: memref<1x32xf32, #tpu.memory_space<vmem>>, %arg9: memref<32x32xbf16, #tpu.memory_space<vmem>>, %arg10: memref<32x32xbf16, #tpu.memory_space<vmem>>, %arg11: memref<32x32xbf16, #tpu.memory_space<vmem>>, %arg12: memref<32x32xbf16, #tpu.memory_space<vmem>>, %arg13: memref<1x32xf32, #tpu.memory_space<vmem>>, %arg14: memref<32x32xbf16, #tpu.memory_space<vmem>>, %arg15: memref<32x32xbf16, #tpu.memory_space<vmem>>, %arg16: memref<32x32xbf16, #tpu.memory_space<vmem>>, %arg17: memref<32x32xbf16, #tpu.memory_space<vmem>>, %arg18: memref<1x32xf32, #tpu.memory_space<vmem>>, %arg19: memref<32x4xf32, #tpu.memory_space<vmem>>, %arg20: memref<1x4xf32, #tpu.memory_space<vmem>>, %arg21: memref<32x128xbf16, #tpu.memory_space<vmem>>, %arg22: memref<1x128xf32, #tpu.memory_space<vmem>>, %arg23: memref<128x32xbf16, #tpu.memory_space<vmem>>, %arg24: memref<1x1x32xf32, #tpu.memory_space<vmem>>, %arg25: memref<8x32xf32, #tpu.memory_space<vmem>>, %arg26: memref<8x32xf32, #tpu.memory_space<vmem>>, %arg27: memref<8x4xf32, #tpu.memory_space<vmem>>) attributes {dimension_semantics = [#tpu.dimension_semantics<parallel>, #tpu.dimension_semantics<arbitrary>], iteration_bounds = array<i64: 2, 4>, scalar_prefetch = 0 : i64, scratch_operands = 2 : i64, tpu.core_type = #tpu.core_type<tc>, window_params = [{transform_indices = @transform_0, window_bounds = array<i64: 8, 32>}, {pipeline_mode = #tpu.pipeline_mode<synchronous>, transform_indices = @transform_1, window_bounds = array<i64: 1, 32>}, {pipeline_mode = #tpu.pipeline_mode<synchronous>, transform_indices = @transform_2, window_bounds = array<i64: 1, 32>}, {pipeline_mode = #tpu.pipeline_mode<synchronous>, transform_indices = @transform_3, window_bounds = array<i64: 1, 32>}, {pipeline_mode = #tpu.pipeline_mode<synchronous>, transform_indices = @transform_4, window_bounds = array<i64: 1, 32>}, {pipeline_mode = #tpu.pipeline_mode<synchronous>, transform_indices = @transform_5, window_bounds = array<i64: 1, 32>}, {pipeline_mode = #tpu.pipeline_mode<synchronous>, transform_indices = @transform_6, window_bounds = array<i64: 1, 32>}, {pipeline_mode = #tpu.pipeline_mode<synchronous>, transform_indices = @transform_7, window_bounds = array<i64: 32, 32>}, {pipeline_mode = #tpu.pipeline_mode<synchronous>, transform_indices = @transform_8, window_bounds = array<i64: 32, 32>}, {pipeline_mode = #tpu.pipeline_mode<synchronous>, transform_indices = @transform_9, window_bounds = array<i64: 32, 32>}, {pipeline_mode = #tpu.pipeline_mode<synchronous>, transform_indices = @transform_10, window_bounds = array<i64: 32, 32>}, {pipeline_mode = #tpu.pipeline_mode<synchronous>, transform_indices = @transform_11, window_bounds = array<i64: 1, 32>}, {pipeline_mode = #tpu.pipeline_mode<synchronous>, transform_indices = @transform_12, window_bounds = array<i64: 32, 32>}, {pipeline_mode = #tpu.pipeline_mode<synchronous>, transform_indices = @transform_13, window_bounds = array<i64: 32, 32>}, {pipeline_mode = #tpu.pipeline_mode<synchronous>, transform_indices = @transform_14, window_bounds = array<i64: 32, 32>}, {pipeline_mode = #tpu.pipeline_mode<synchronous>, transform_indices = @transform_15, window_bounds = array<i64: 32, 32>}, {pipeline_mode = #tpu.pipeline_mode<synchronous>, transform_indices = @transform_16, window_bounds = array<i64: 1, 32>}, {pipeline_mode = #tpu.pipeline_mode<synchronous>, transform_indices = @transform_17, window_bounds = array<i64: 32, 4>}, {pipeline_mode = #tpu.pipeline_mode<synchronous>, transform_indices = @transform_18, window_bounds = array<i64: 1, 4>}, {transform_indices = @transform_19, window_bounds = array<i64: 32, 128>}, {transform_indices = @transform_20, window_bounds = array<i64: 1, 128>}, {transform_indices = @transform_21, window_bounds = array<i64: 128, 32>}, {transform_indices = @transform_22, window_bounds = array<i64: 1, 1, 32>}, {transform_indices = @transform_23, window_bounds = array<i64: 8, 32>}]} {
    %c0_i32 = arith.constant 0 : i32
    %0 = arith.cmpi eq, %arg1, %c0_i32 : i32
    %1 = arith.extui %0 : i1 to i32
    %c0_i32_0 = arith.constant 0 : i32
    %2 = arith.cmpi ne, %1, %c0_i32_0 : i32
    scf.if %2 {
      %c0_21 = arith.constant 0 : index
      %c0_22 = arith.constant 0 : index
      %32 = vector.load %arg2[%c0_21, %c0_22] : memref<8x32xf32, #tpu.memory_space<vmem>>, vector<8x32xf32>
      %cst_23 = arith.constant dense<0.000000e+00> : vector<8xf32>
      %33 = vector.multi_reduction <add>, %32, %cst_23 [1] : vector<8x32xf32> to vector<8xf32>
      %34 = vector.shape_cast %33 : vector<8xf32> to vector<8x1xf32>
      %cst_24 = arith.constant 3.200000e+01 : f32
      %35 = vector.broadcast %cst_24 : f32 to vector<8x1xf32>
      %36 = arith.divf %34, %35 : vector<8x1xf32>
      %37 = vector.broadcast %36 : vector<8x1xf32> to vector<8x32xf32>
      %38 = arith.subf %32, %37 : vector<8x32xf32>
      %39 = arith.mulf %38, %38 : vector<8x32xf32>
      %cst_25 = arith.constant dense<0.000000e+00> : vector<8xf32>
      %40 = vector.multi_reduction <add>, %39, %cst_25 [1] : vector<8x32xf32> to vector<8xf32>
      %41 = vector.shape_cast %40 : vector<8xf32> to vector<8x1xf32>
      %cst_26 = arith.constant 3.200000e+01 : f32
      %42 = vector.broadcast %cst_26 : f32 to vector<8x1xf32>
      %43 = arith.divf %41, %42 : vector<8x1xf32>
      %44 = vector.broadcast %36 : vector<8x1xf32> to vector<8x32xf32>
      %45 = arith.subf %32, %44 : vector<8x32xf32>
      %cst_27 = arith.constant 9.99999974E-6 : f32
      %46 = vector.broadcast %cst_27 : f32 to vector<8x1xf32>
      %47 = arith.addf %43, %46 : vector<8x1xf32>
      %48 = math.rsqrt %47 : vector<8x1xf32>
      %49 = vector.broadcast %48 : vector<8x1xf32> to vector<8x32xf32>
      %50 = arith.mulf %45, %49 : vector<8x32xf32>
      %c0_28 = arith.constant 0 : index
      %c0_29 = arith.constant 0 : index
      %51 = vector.load %arg3[%c0_28, %c0_29] : memref<1x32xf32, #tpu.memory_space<vmem>>, vector<1x32xf32>
      %52 = vector.broadcast %51 : vector<1x32xf32> to vector<8x32xf32>
      %53 = arith.mulf %50, %52 : vector<8x32xf32>
      %c0_30 = arith.constant 0 : index
      %c0_31 = arith.constant 0 : index
      %54 = vector.load %arg4[%c0_30, %c0_31] : memref<1x32xf32, #tpu.memory_space<vmem>>, vector<1x32xf32>
      %55 = vector.broadcast %54 : vector<1x32xf32> to vector<8x32xf32>
      %56 = arith.addf %53, %55 : vector<8x32xf32>
      %57 = arith.truncf %56 : vector<8x32xf32> to vector<8x32xbf16>
      %58 = arith.truncf %56 : vector<8x32xf32> to vector<8x32xbf16>
      %c0_32 = arith.constant 0 : index
      %c0_33 = arith.constant 0 : index
      %59 = vector.load %arg9[%c0_32, %c0_33] : memref<32x32xbf16, #tpu.memory_space<vmem>>, vector<32x32xbf16>
      %cst_34 = arith.constant dense<0.000000e+00> : vector<8x32xf32>
      %60 = tpu.matmul %57, %59, %cst_34 {dimension_numbers = #tpu.dot_dimension_numbers<[1], [0], [0], [1], [0, 0, 1, 1], [], []>} : vector<8x32xbf16>, vector<32x32xbf16>, vector<8x32xf32> -> vector<8x32xf32>
      %61 = arith.truncf %60 : vector<8x32xf32> to vector<8x32xbf16>
      %c0_35 = arith.constant 0 : index
      %c0_36 = arith.constant 0 : index
      %62 = vector.load %arg10[%c0_35, %c0_36] : memref<32x32xbf16, #tpu.memory_space<vmem>>, vector<32x32xbf16>
      %cst_37 = arith.constant dense<0.000000e+00> : vector<8x32xf32>
      %63 = tpu.matmul %58, %62, %cst_37 {dimension_numbers = #tpu.dot_dimension_numbers<[1], [0], [0], [1], [0, 0, 1, 1], [], []>} : vector<8x32xbf16>, vector<32x32xbf16>, vector<8x32xf32> -> vector<8x32xf32>
      %64 = arith.truncf %63 : vector<8x32xf32> to vector<8x32xbf16>
      %c0_38 = arith.constant 0 : index
      %c0_39 = arith.constant 0 : index
      %65 = vector.load %arg11[%c0_38, %c0_39] : memref<32x32xbf16, #tpu.memory_space<vmem>>, vector<32x32xbf16>
      %cst_40 = arith.constant dense<0.000000e+00> : vector<8x32xf32>
      %66 = tpu.matmul %58, %65, %cst_40 {dimension_numbers = #tpu.dot_dimension_numbers<[1], [0], [0], [1], [0, 0, 1, 1], [], []>} : vector<8x32xbf16>, vector<32x32xbf16>, vector<8x32xf32> -> vector<8x32xf32>
      %67 = arith.truncf %66 : vector<8x32xf32> to vector<8x32xbf16>
      %c0_41 = arith.constant 0 : index
      %c0_42 = arith.constant 0 : index
      %68 = vector.load %arg12[%c0_41, %c0_42] : memref<32x32xbf16, #tpu.memory_space<vmem>>, vector<32x32xbf16>
      %cst_43 = arith.constant 0.000000e+00 : f32
      %69 = vector.broadcast %cst_43 : f32 to vector<8x32xf32>
      %70 = vector.extract_strided_slice %61 {offsets = [0, 0], sizes = [8, 8], strides = [1, 1]} : vector<8x32xbf16> to vector<8x8xbf16>
      %71 = vector.extract_strided_slice %64 {offsets = [0, 0], sizes = [8, 8], strides = [1, 1]} : vector<8x32xbf16> to vector<8x8xbf16>
      %cst_44 = arith.constant dense<0.000000e+00> : vector<8x8xf32>
      %72 = tpu.matmul %70, %71, %cst_44 {dimension_numbers = #tpu.dot_dimension_numbers<[1], [1], [0], [0], [0, 0, 1, 0], [], []>} : vector<8x8xbf16>, vector<8x8xbf16>, vector<8x8xf32> -> vector<8x8xf32>
      %cst_45 = arith.constant 0.353553385 : f32
      %73 = vector.broadcast %cst_45 : f32 to vector<8x8xf32>
      %74 = arith.mulf %72, %73 : vector<8x8xf32>
      %cst_46 = arith.constant dense<0xFF800000> : vector<8xf32>
      %75 = vector.multi_reduction <maximumf>, %74, %cst_46 [1] : vector<8x8xf32> to vector<8xf32>
      %76 = vector.shape_cast %75 : vector<8xf32> to vector<8x1xf32>
      %77 = vector.broadcast %76 : vector<8x1xf32> to vector<8x8xf32>
      %78 = arith.subf %74, %77 : vector<8x8xf32>
      %79 = math.exp %78 : vector<8x8xf32>
      %cst_47 = arith.constant dense<0.000000e+00> : vector<8xf32>
      %80 = vector.multi_reduction <add>, %79, %cst_47 [1] : vector<8x8xf32> to vector<8xf32>
      %81 = vector.shape_cast %80 : vector<8xf32> to vector<8x1xf32>
      %82 = tpu.reciprocal %81 {approx = true} : vector<8x1xf32> -> vector<8x1xf32>
      %83 = vector.broadcast %82 : vector<8x1xf32> to vector<8x8xf32>
      %84 = arith.mulf %79, %83 : vector<8x8xf32>
      %85 = arith.truncf %84 : vector<8x8xf32> to vector<8x8xbf16>
      %86 = vector.extract_strided_slice %67 {offsets = [0, 0], sizes = [8, 8], strides = [1, 1]} : vector<8x32xbf16> to vector<8x8xbf16>
      %cst_48 = arith.constant dense<0.000000e+00> : vector<8x8xf32>
      %87 = tpu.matmul %85, %86, %cst_48 {dimension_numbers = #tpu.dot_dimension_numbers<[1], [0], [0], [1], [0, 0, 1, 1], [], []>} : vector<8x8xbf16>, vector<8x8xbf16>, vector<8x8xf32> -> vector<8x8xf32>
      %88 = arith.truncf %87 : vector<8x8xf32> to vector<8x8xbf16>
      %89 = vector.extract_strided_slice %68 {offsets = [0, 0], sizes = [8, 32], strides = [1, 1]} : vector<32x32xbf16> to vector<8x32xbf16>
      %cst_49 = arith.constant dense<0.000000e+00> : vector<8x32xf32>
      %90 = tpu.matmul %88, %89, %cst_49 {dimension_numbers = #tpu.dot_dimension_numbers<[1], [0], [0], [1], [0, 0, 1, 1], [], []>} : vector<8x8xbf16>, vector<8x32xbf16>, vector<8x32xf32> -> vector<8x32xf32>
      %91 = arith.addf %69, %90 : vector<8x32xf32>
      %92 = vector.extract_strided_slice %61 {offsets = [0, 8], sizes = [8, 8], strides = [1, 1]} : vector<8x32xbf16> to vector<8x8xbf16>
      %93 = vector.extract_strided_slice %64 {offsets = [0, 8], sizes = [8, 8], strides = [1, 1]} : vector<8x32xbf16> to vector<8x8xbf16>
      %cst_50 = arith.constant dense<0.000000e+00> : vector<8x8xf32>
      %94 = tpu.matmul %92, %93, %cst_50 {dimension_numbers = #tpu.dot_dimension_numbers<[1], [1], [0], [0], [0, 0, 1, 0], [], []>} : vector<8x8xbf16>, vector<8x8xbf16>, vector<8x8xf32> -> vector<8x8xf32>
      %cst_51 = arith.constant 0.353553385 : f32
      %95 = vector.broadcast %cst_51 : f32 to vector<8x8xf32>
      %96 = arith.mulf %94, %95 : vector<8x8xf32>
      %cst_52 = arith.constant dense<0xFF800000> : vector<8xf32>
      %97 = vector.multi_reduction <maximumf>, %96, %cst_52 [1] : vector<8x8xf32> to vector<8xf32>
      %98 = vector.shape_cast %97 : vector<8xf32> to vector<8x1xf32>
      %99 = vector.broadcast %98 : vector<8x1xf32> to vector<8x8xf32>
      %100 = arith.subf %96, %99 : vector<8x8xf32>
      %101 = math.exp %100 : vector<8x8xf32>
      %cst_53 = arith.constant dense<0.000000e+00> : vector<8xf32>
      %102 = vector.multi_reduction <add>, %101, %cst_53 [1] : vector<8x8xf32> to vector<8xf32>
      %103 = vector.shape_cast %102 : vector<8xf32> to vector<8x1xf32>
      %104 = tpu.reciprocal %103 {approx = true} : vector<8x1xf32> -> vector<8x1xf32>
      %105 = vector.broadcast %104 : vector<8x1xf32> to vector<8x8xf32>
      %106 = arith.mulf %101, %105 : vector<8x8xf32>
      %107 = arith.truncf %106 : vector<8x8xf32> to vector<8x8xbf16>
      %108 = vector.extract_strided_slice %67 {offsets = [0, 8], sizes = [8, 8], strides = [1, 1]} : vector<8x32xbf16> to vector<8x8xbf16>
      %cst_54 = arith.constant dense<0.000000e+00> : vector<8x8xf32>
      %109 = tpu.matmul %107, %108, %cst_54 {dimension_numbers = #tpu.dot_dimension_numbers<[1], [0], [0], [1], [0, 0, 1, 1], [], []>} : vector<8x8xbf16>, vector<8x8xbf16>, vector<8x8xf32> -> vector<8x8xf32>
      %110 = arith.truncf %109 : vector<8x8xf32> to vector<8x8xbf16>
      %111 = vector.extract_strided_slice %68 {offsets = [8, 0], sizes = [8, 32], strides = [1, 1]} : vector<32x32xbf16> to vector<8x32xbf16>
      %cst_55 = arith.constant dense<0.000000e+00> : vector<8x32xf32>
      %112 = tpu.matmul %110, %111, %cst_55 {dimension_numbers = #tpu.dot_dimension_numbers<[1], [0], [0], [1], [0, 0, 1, 1], [], []>} : vector<8x8xbf16>, vector<8x32xbf16>, vector<8x32xf32> -> vector<8x32xf32>
      %113 = arith.addf %91, %112 : vector<8x32xf32>
      %114 = vector.extract_strided_slice %61 {offsets = [0, 16], sizes = [8, 8], strides = [1, 1]} : vector<8x32xbf16> to vector<8x8xbf16>
      %115 = vector.extract_strided_slice %64 {offsets = [0, 16], sizes = [8, 8], strides = [1, 1]} : vector<8x32xbf16> to vector<8x8xbf16>
      %cst_56 = arith.constant dense<0.000000e+00> : vector<8x8xf32>
      %116 = tpu.matmul %114, %115, %cst_56 {dimension_numbers = #tpu.dot_dimension_numbers<[1], [1], [0], [0], [0, 0, 1, 0], [], []>} : vector<8x8xbf16>, vector<8x8xbf16>, vector<8x8xf32> -> vector<8x8xf32>
      %cst_57 = arith.constant 0.353553385 : f32
      %117 = vector.broadcast %cst_57 : f32 to vector<8x8xf32>
      %118 = arith.mulf %116, %117 : vector<8x8xf32>
      %cst_58 = arith.constant dense<0xFF800000> : vector<8xf32>
      %119 = vector.multi_reduction <maximumf>, %118, %cst_58 [1] : vector<8x8xf32> to vector<8xf32>
      %120 = vector.shape_cast %119 : vector<8xf32> to vector<8x1xf32>
      %121 = vector.broadcast %120 : vector<8x1xf32> to vector<8x8xf32>
      %122 = arith.subf %118, %121 : vector<8x8xf32>
      %123 = math.exp %122 : vector<8x8xf32>
      %cst_59 = arith.constant dense<0.000000e+00> : vector<8xf32>
      %124 = vector.multi_reduction <add>, %123, %cst_59 [1] : vector<8x8xf32> to vector<8xf32>
      %125 = vector.shape_cast %124 : vector<8xf32> to vector<8x1xf32>
      %126 = tpu.reciprocal %125 {approx = true} : vector<8x1xf32> -> vector<8x1xf32>
      %127 = vector.broadcast %126 : vector<8x1xf32> to vector<8x8xf32>
      %128 = arith.mulf %123, %127 : vector<8x8xf32>
      %129 = arith.truncf %128 : vector<8x8xf32> to vector<8x8xbf16>
      %130 = vector.extract_strided_slice %67 {offsets = [0, 16], sizes = [8, 8], strides = [1, 1]} : vector<8x32xbf16> to vector<8x8xbf16>
      %cst_60 = arith.constant dense<0.000000e+00> : vector<8x8xf32>
      %131 = tpu.matmul %129, %130, %cst_60 {dimension_numbers = #tpu.dot_dimension_numbers<[1], [0], [0], [1], [0, 0, 1, 1], [], []>} : vector<8x8xbf16>, vector<8x8xbf16>, vector<8x8xf32> -> vector<8x8xf32>
      %132 = arith.truncf %131 : vector<8x8xf32> to vector<8x8xbf16>
      %133 = vector.extract_strided_slice %68 {offsets = [16, 0], sizes = [8, 32], strides = [1, 1]} : vector<32x32xbf16> to vector<8x32xbf16>
      %cst_61 = arith.constant dense<0.000000e+00> : vector<8x32xf32>
      %134 = tpu.matmul %132, %133, %cst_61 {dimension_numbers = #tpu.dot_dimension_numbers<[1], [0], [0], [1], [0, 0, 1, 1], [], []>} : vector<8x8xbf16>, vector<8x32xbf16>, vector<8x32xf32> -> vector<8x32xf32>
      %135 = arith.addf %113, %134 : vector<8x32xf32>
      %136 = vector.extract_strided_slice %61 {offsets = [0, 24], sizes = [8, 8], strides = [1, 1]} : vector<8x32xbf16> to vector<8x8xbf16>
      %137 = vector.extract_strided_slice %64 {offsets = [0, 24], sizes = [8, 8], strides = [1, 1]} : vector<8x32xbf16> to vector<8x8xbf16>
      %cst_62 = arith.constant dense<0.000000e+00> : vector<8x8xf32>
      %138 = tpu.matmul %136, %137, %cst_62 {dimension_numbers = #tpu.dot_dimension_numbers<[1], [1], [0], [0], [0, 0, 1, 0], [], []>} : vector<8x8xbf16>, vector<8x8xbf16>, vector<8x8xf32> -> vector<8x8xf32>
      %cst_63 = arith.constant 0.353553385 : f32
      %139 = vector.broadcast %cst_63 : f32 to vector<8x8xf32>
      %140 = arith.mulf %138, %139 : vector<8x8xf32>
      %cst_64 = arith.constant dense<0xFF800000> : vector<8xf32>
      %141 = vector.multi_reduction <maximumf>, %140, %cst_64 [1] : vector<8x8xf32> to vector<8xf32>
      %142 = vector.shape_cast %141 : vector<8xf32> to vector<8x1xf32>
      %143 = vector.broadcast %142 : vector<8x1xf32> to vector<8x8xf32>
      %144 = arith.subf %140, %143 : vector<8x8xf32>
      %145 = math.exp %144 : vector<8x8xf32>
      %cst_65 = arith.constant dense<0.000000e+00> : vector<8xf32>
      %146 = vector.multi_reduction <add>, %145, %cst_65 [1] : vector<8x8xf32> to vector<8xf32>
      %147 = vector.shape_cast %146 : vector<8xf32> to vector<8x1xf32>
      %148 = tpu.reciprocal %147 {approx = true} : vector<8x1xf32> -> vector<8x1xf32>
      %149 = vector.broadcast %148 : vector<8x1xf32> to vector<8x8xf32>
      %150 = arith.mulf %145, %149 : vector<8x8xf32>
      %151 = arith.truncf %150 : vector<8x8xf32> to vector<8x8xbf16>
      %152 = vector.extract_strided_slice %67 {offsets = [0, 24], sizes = [8, 8], strides = [1, 1]} : vector<8x32xbf16> to vector<8x8xbf16>
      %cst_66 = arith.constant dense<0.000000e+00> : vector<8x8xf32>
      %153 = tpu.matmul %151, %152, %cst_66 {dimension_numbers = #tpu.dot_dimension_numbers<[1], [0], [0], [1], [0, 0, 1, 1], [], []>} : vector<8x8xbf16>, vector<8x8xbf16>, vector<8x8xf32> -> vector<8x8xf32>
      %154 = arith.truncf %153 : vector<8x8xf32> to vector<8x8xbf16>
      %155 = vector.extract_strided_slice %68 {offsets = [24, 0], sizes = [8, 32], strides = [1, 1]} : vector<32x32xbf16> to vector<8x32xbf16>
      %cst_67 = arith.constant dense<0.000000e+00> : vector<8x32xf32>
      %156 = tpu.matmul %154, %155, %cst_67 {dimension_numbers = #tpu.dot_dimension_numbers<[1], [0], [0], [1], [0, 0, 1, 1], [], []>} : vector<8x8xbf16>, vector<8x32xbf16>, vector<8x32xf32> -> vector<8x32xf32>
      %157 = arith.addf %135, %156 : vector<8x32xf32>
      %c0_68 = arith.constant 0 : index
      %c0_69 = arith.constant 0 : index
      %158 = vector.load %arg13[%c0_68, %c0_69] : memref<1x32xf32, #tpu.memory_space<vmem>>, vector<1x32xf32>
      %159 = vector.broadcast %158 : vector<1x32xf32> to vector<8x32xf32>
      %160 = arith.addf %157, %159 : vector<8x32xf32>
      %161 = arith.addf %56, %160 : vector<8x32xf32>
      %cst_70 = arith.constant dense<0.000000e+00> : vector<8xf32>
      %162 = vector.multi_reduction <add>, %161, %cst_70 [1] : vector<8x32xf32> to vector<8xf32>
      %163 = vector.shape_cast %162 : vector<8xf32> to vector<8x1xf32>
      %cst_71 = arith.constant 3.200000e+01 : f32
      %164 = vector.broadcast %cst_71 : f32 to vector<8x1xf32>
      %165 = arith.divf %163, %164 : vector<8x1xf32>
      %166 = vector.broadcast %165 : vector<8x1xf32> to vector<8x32xf32>
      %167 = arith.subf %161, %166 : vector<8x32xf32>
      %168 = arith.mulf %167, %167 : vector<8x32xf32>
      %cst_72 = arith.constant dense<0.000000e+00> : vector<8xf32>
      %169 = vector.multi_reduction <add>, %168, %cst_72 [1] : vector<8x32xf32> to vector<8xf32>
      %170 = vector.shape_cast %169 : vector<8xf32> to vector<8x1xf32>
      %cst_73 = arith.constant 3.200000e+01 : f32
      %171 = vector.broadcast %cst_73 : f32 to vector<8x1xf32>
      %172 = arith.divf %170, %171 : vector<8x1xf32>
      %173 = vector.broadcast %165 : vector<8x1xf32> to vector<8x32xf32>
      %174 = arith.subf %161, %173 : vector<8x32xf32>
      %cst_74 = arith.constant 9.99999974E-6 : f32
      %175 = vector.broadcast %cst_74 : f32 to vector<8x1xf32>
      %176 = arith.addf %172, %175 : vector<8x1xf32>
      %177 = math.rsqrt %176 : vector<8x1xf32>
      %178 = vector.broadcast %177 : vector<8x1xf32> to vector<8x32xf32>
      %179 = arith.mulf %174, %178 : vector<8x32xf32>
      %c0_75 = arith.constant 0 : index
      %c0_76 = arith.constant 0 : index
      %180 = vector.load %arg5[%c0_75, %c0_76] : memref<1x32xf32, #tpu.memory_space<vmem>>, vector<1x32xf32>
      %181 = vector.broadcast %180 : vector<1x32xf32> to vector<8x32xf32>
      %182 = arith.mulf %179, %181 : vector<8x32xf32>
      %c0_77 = arith.constant 0 : index
      %c0_78 = arith.constant 0 : index
      %183 = vector.load %arg6[%c0_77, %c0_78] : memref<1x32xf32, #tpu.memory_space<vmem>>, vector<1x32xf32>
      %184 = vector.broadcast %183 : vector<1x32xf32> to vector<8x32xf32>
      %185 = arith.addf %182, %184 : vector<8x32xf32>
      %186 = arith.truncf %185 : vector<8x32xf32> to vector<8x32xbf16>
      %187 = arith.truncf %32 : vector<8x32xf32> to vector<8x32xbf16>
      %c0_79 = arith.constant 0 : index
      %c0_80 = arith.constant 0 : index
      %188 = vector.load %arg14[%c0_79, %c0_80] : memref<32x32xbf16, #tpu.memory_space<vmem>>, vector<32x32xbf16>
      %cst_81 = arith.constant dense<0.000000e+00> : vector<8x32xf32>
      %189 = tpu.matmul %186, %188, %cst_81 {dimension_numbers = #tpu.dot_dimension_numbers<[1], [0], [0], [1], [0, 0, 1, 1], [], []>} : vector<8x32xbf16>, vector<32x32xbf16>, vector<8x32xf32> -> vector<8x32xf32>
      %190 = arith.truncf %189 : vector<8x32xf32> to vector<8x32xbf16>
      %c0_82 = arith.constant 0 : index
      %c0_83 = arith.constant 0 : index
      %191 = vector.load %arg15[%c0_82, %c0_83] : memref<32x32xbf16, #tpu.memory_space<vmem>>, vector<32x32xbf16>
      %cst_84 = arith.constant dense<0.000000e+00> : vector<8x32xf32>
      %192 = tpu.matmul %187, %191, %cst_84 {dimension_numbers = #tpu.dot_dimension_numbers<[1], [0], [0], [1], [0, 0, 1, 1], [], []>} : vector<8x32xbf16>, vector<32x32xbf16>, vector<8x32xf32> -> vector<8x32xf32>
      %193 = arith.truncf %192 : vector<8x32xf32> to vector<8x32xbf16>
      %c0_85 = arith.constant 0 : index
      %c0_86 = arith.constant 0 : index
      %194 = vector.load %arg16[%c0_85, %c0_86] : memref<32x32xbf16, #tpu.memory_space<vmem>>, vector<32x32xbf16>
      %cst_87 = arith.constant dense<0.000000e+00> : vector<8x32xf32>
      %195 = tpu.matmul %187, %194, %cst_87 {dimension_numbers = #tpu.dot_dimension_numbers<[1], [0], [0], [1], [0, 0, 1, 1], [], []>} : vector<8x32xbf16>, vector<32x32xbf16>, vector<8x32xf32> -> vector<8x32xf32>
      %196 = arith.truncf %195 : vector<8x32xf32> to vector<8x32xbf16>
      %c0_88 = arith.constant 0 : index
      %c0_89 = arith.constant 0 : index
      %197 = vector.load %arg17[%c0_88, %c0_89] : memref<32x32xbf16, #tpu.memory_space<vmem>>, vector<32x32xbf16>
      %cst_90 = arith.constant 0.000000e+00 : f32
      %198 = vector.broadcast %cst_90 : f32 to vector<8x32xf32>
      %199 = vector.extract_strided_slice %190 {offsets = [0, 0], sizes = [8, 8], strides = [1, 1]} : vector<8x32xbf16> to vector<8x8xbf16>
      %200 = vector.extract_strided_slice %193 {offsets = [0, 0], sizes = [8, 8], strides = [1, 1]} : vector<8x32xbf16> to vector<8x8xbf16>
      %cst_91 = arith.constant dense<0.000000e+00> : vector<8x8xf32>
      %201 = tpu.matmul %199, %200, %cst_91 {dimension_numbers = #tpu.dot_dimension_numbers<[1], [1], [0], [0], [0, 0, 1, 0], [], []>} : vector<8x8xbf16>, vector<8x8xbf16>, vector<8x8xf32> -> vector<8x8xf32>
      %cst_92 = arith.constant 0.353553385 : f32
      %202 = vector.broadcast %cst_92 : f32 to vector<8x8xf32>
      %203 = arith.mulf %201, %202 : vector<8x8xf32>
      %cst_93 = arith.constant dense<0xFF800000> : vector<8xf32>
      %204 = vector.multi_reduction <maximumf>, %203, %cst_93 [1] : vector<8x8xf32> to vector<8xf32>
      %205 = vector.shape_cast %204 : vector<8xf32> to vector<8x1xf32>
      %206 = vector.broadcast %205 : vector<8x1xf32> to vector<8x8xf32>
      %207 = arith.subf %203, %206 : vector<8x8xf32>
      %208 = math.exp %207 : vector<8x8xf32>
      %cst_94 = arith.constant dense<0.000000e+00> : vector<8xf32>
      %209 = vector.multi_reduction <add>, %208, %cst_94 [1] : vector<8x8xf32> to vector<8xf32>
      %210 = vector.shape_cast %209 : vector<8xf32> to vector<8x1xf32>
      %211 = tpu.reciprocal %210 {approx = true} : vector<8x1xf32> -> vector<8x1xf32>
      %212 = vector.broadcast %211 : vector<8x1xf32> to vector<8x8xf32>
      %213 = arith.mulf %208, %212 : vector<8x8xf32>
      %214 = arith.truncf %213 : vector<8x8xf32> to vector<8x8xbf16>
      %215 = vector.extract_strided_slice %196 {offsets = [0, 0], sizes = [8, 8], strides = [1, 1]} : vector<8x32xbf16> to vector<8x8xbf16>
      %cst_95 = arith.constant dense<0.000000e+00> : vector<8x8xf32>
      %216 = tpu.matmul %214, %215, %cst_95 {dimension_numbers = #tpu.dot_dimension_numbers<[1], [0], [0], [1], [0, 0, 1, 1], [], []>} : vector<8x8xbf16>, vector<8x8xbf16>, vector<8x8xf32> -> vector<8x8xf32>
      %217 = arith.truncf %216 : vector<8x8xf32> to vector<8x8xbf16>
      %218 = vector.extract_strided_slice %197 {offsets = [0, 0], sizes = [8, 32], strides = [1, 1]} : vector<32x32xbf16> to vector<8x32xbf16>
      %cst_96 = arith.constant dense<0.000000e+00> : vector<8x32xf32>
      %219 = tpu.matmul %217, %218, %cst_96 {dimension_numbers = #tpu.dot_dimension_numbers<[1], [0], [0], [1], [0, 0, 1, 1], [], []>} : vector<8x8xbf16>, vector<8x32xbf16>, vector<8x32xf32> -> vector<8x32xf32>
      %220 = arith.addf %198, %219 : vector<8x32xf32>
      %221 = vector.extract_strided_slice %190 {offsets = [0, 8], sizes = [8, 8], strides = [1, 1]} : vector<8x32xbf16> to vector<8x8xbf16>
      %222 = vector.extract_strided_slice %193 {offsets = [0, 8], sizes = [8, 8], strides = [1, 1]} : vector<8x32xbf16> to vector<8x8xbf16>
      %cst_97 = arith.constant dense<0.000000e+00> : vector<8x8xf32>
      %223 = tpu.matmul %221, %222, %cst_97 {dimension_numbers = #tpu.dot_dimension_numbers<[1], [1], [0], [0], [0, 0, 1, 0], [], []>} : vector<8x8xbf16>, vector<8x8xbf16>, vector<8x8xf32> -> vector<8x8xf32>
      %cst_98 = arith.constant 0.353553385 : f32
      %224 = vector.broadcast %cst_98 : f32 to vector<8x8xf32>
      %225 = arith.mulf %223, %224 : vector<8x8xf32>
      %cst_99 = arith.constant dense<0xFF800000> : vector<8xf32>
      %226 = vector.multi_reduction <maximumf>, %225, %cst_99 [1] : vector<8x8xf32> to vector<8xf32>
      %227 = vector.shape_cast %226 : vector<8xf32> to vector<8x1xf32>
      %228 = vector.broadcast %227 : vector<8x1xf32> to vector<8x8xf32>
      %229 = arith.subf %225, %228 : vector<8x8xf32>
      %230 = math.exp %229 : vector<8x8xf32>
      %cst_100 = arith.constant dense<0.000000e+00> : vector<8xf32>
      %231 = vector.multi_reduction <add>, %230, %cst_100 [1] : vector<8x8xf32> to vector<8xf32>
      %232 = vector.shape_cast %231 : vector<8xf32> to vector<8x1xf32>
      %233 = tpu.reciprocal %232 {approx = true} : vector<8x1xf32> -> vector<8x1xf32>
      %234 = vector.broadcast %233 : vector<8x1xf32> to vector<8x8xf32>
      %235 = arith.mulf %230, %234 : vector<8x8xf32>
      %236 = arith.truncf %235 : vector<8x8xf32> to vector<8x8xbf16>
      %237 = vector.extract_strided_slice %196 {offsets = [0, 8], sizes = [8, 8], strides = [1, 1]} : vector<8x32xbf16> to vector<8x8xbf16>
      %cst_101 = arith.constant dense<0.000000e+00> : vector<8x8xf32>
      %238 = tpu.matmul %236, %237, %cst_101 {dimension_numbers = #tpu.dot_dimension_numbers<[1], [0], [0], [1], [0, 0, 1, 1], [], []>} : vector<8x8xbf16>, vector<8x8xbf16>, vector<8x8xf32> -> vector<8x8xf32>
      %239 = arith.truncf %238 : vector<8x8xf32> to vector<8x8xbf16>
      %240 = vector.extract_strided_slice %197 {offsets = [8, 0], sizes = [8, 32], strides = [1, 1]} : vector<32x32xbf16> to vector<8x32xbf16>
      %cst_102 = arith.constant dense<0.000000e+00> : vector<8x32xf32>
      %241 = tpu.matmul %239, %240, %cst_102 {dimension_numbers = #tpu.dot_dimension_numbers<[1], [0], [0], [1], [0, 0, 1, 1], [], []>} : vector<8x8xbf16>, vector<8x32xbf16>, vector<8x32xf32> -> vector<8x32xf32>
      %242 = arith.addf %220, %241 : vector<8x32xf32>
      %243 = vector.extract_strided_slice %190 {offsets = [0, 16], sizes = [8, 8], strides = [1, 1]} : vector<8x32xbf16> to vector<8x8xbf16>
      %244 = vector.extract_strided_slice %193 {offsets = [0, 16], sizes = [8, 8], strides = [1, 1]} : vector<8x32xbf16> to vector<8x8xbf16>
      %cst_103 = arith.constant dense<0.000000e+00> : vector<8x8xf32>
      %245 = tpu.matmul %243, %244, %cst_103 {dimension_numbers = #tpu.dot_dimension_numbers<[1], [1], [0], [0], [0, 0, 1, 0], [], []>} : vector<8x8xbf16>, vector<8x8xbf16>, vector<8x8xf32> -> vector<8x8xf32>
      %cst_104 = arith.constant 0.353553385 : f32
      %246 = vector.broadcast %cst_104 : f32 to vector<8x8xf32>
      %247 = arith.mulf %245, %246 : vector<8x8xf32>
      %cst_105 = arith.constant dense<0xFF800000> : vector<8xf32>
      %248 = vector.multi_reduction <maximumf>, %247, %cst_105 [1] : vector<8x8xf32> to vector<8xf32>
      %249 = vector.shape_cast %248 : vector<8xf32> to vector<8x1xf32>
      %250 = vector.broadcast %249 : vector<8x1xf32> to vector<8x8xf32>
      %251 = arith.subf %247, %250 : vector<8x8xf32>
      %252 = math.exp %251 : vector<8x8xf32>
      %cst_106 = arith.constant dense<0.000000e+00> : vector<8xf32>
      %253 = vector.multi_reduction <add>, %252, %cst_106 [1] : vector<8x8xf32> to vector<8xf32>
      %254 = vector.shape_cast %253 : vector<8xf32> to vector<8x1xf32>
      %255 = tpu.reciprocal %254 {approx = true} : vector<8x1xf32> -> vector<8x1xf32>
      %256 = vector.broadcast %255 : vector<8x1xf32> to vector<8x8xf32>
      %257 = arith.mulf %252, %256 : vector<8x8xf32>
      %258 = arith.truncf %257 : vector<8x8xf32> to vector<8x8xbf16>
      %259 = vector.extract_strided_slice %196 {offsets = [0, 16], sizes = [8, 8], strides = [1, 1]} : vector<8x32xbf16> to vector<8x8xbf16>
      %cst_107 = arith.constant dense<0.000000e+00> : vector<8x8xf32>
      %260 = tpu.matmul %258, %259, %cst_107 {dimension_numbers = #tpu.dot_dimension_numbers<[1], [0], [0], [1], [0, 0, 1, 1], [], []>} : vector<8x8xbf16>, vector<8x8xbf16>, vector<8x8xf32> -> vector<8x8xf32>
      %261 = arith.truncf %260 : vector<8x8xf32> to vector<8x8xbf16>
      %262 = vector.extract_strided_slice %197 {offsets = [16, 0], sizes = [8, 32], strides = [1, 1]} : vector<32x32xbf16> to vector<8x32xbf16>
      %cst_108 = arith.constant dense<0.000000e+00> : vector<8x32xf32>
      %263 = tpu.matmul %261, %262, %cst_108 {dimension_numbers = #tpu.dot_dimension_numbers<[1], [0], [0], [1], [0, 0, 1, 1], [], []>} : vector<8x8xbf16>, vector<8x32xbf16>, vector<8x32xf32> -> vector<8x32xf32>
      %264 = arith.addf %242, %263 : vector<8x32xf32>
      %265 = vector.extract_strided_slice %190 {offsets = [0, 24], sizes = [8, 8], strides = [1, 1]} : vector<8x32xbf16> to vector<8x8xbf16>
      %266 = vector.extract_strided_slice %193 {offsets = [0, 24], sizes = [8, 8], strides = [1, 1]} : vector<8x32xbf16> to vector<8x8xbf16>
      %cst_109 = arith.constant dense<0.000000e+00> : vector<8x8xf32>
      %267 = tpu.matmul %265, %266, %cst_109 {dimension_numbers = #tpu.dot_dimension_numbers<[1], [1], [0], [0], [0, 0, 1, 0], [], []>} : vector<8x8xbf16>, vector<8x8xbf16>, vector<8x8xf32> -> vector<8x8xf32>
      %cst_110 = arith.constant 0.353553385 : f32
      %268 = vector.broadcast %cst_110 : f32 to vector<8x8xf32>
      %269 = arith.mulf %267, %268 : vector<8x8xf32>
      %cst_111 = arith.constant dense<0xFF800000> : vector<8xf32>
      %270 = vector.multi_reduction <maximumf>, %269, %cst_111 [1] : vector<8x8xf32> to vector<8xf32>
      %271 = vector.shape_cast %270 : vector<8xf32> to vector<8x1xf32>
      %272 = vector.broadcast %271 : vector<8x1xf32> to vector<8x8xf32>
      %273 = arith.subf %269, %272 : vector<8x8xf32>
      %274 = math.exp %273 : vector<8x8xf32>
      %cst_112 = arith.constant dense<0.000000e+00> : vector<8xf32>
      %275 = vector.multi_reduction <add>, %274, %cst_112 [1] : vector<8x8xf32> to vector<8xf32>
      %276 = vector.shape_cast %275 : vector<8xf32> to vector<8x1xf32>
      %277 = tpu.reciprocal %276 {approx = true} : vector<8x1xf32> -> vector<8x1xf32>
      %278 = vector.broadcast %277 : vector<8x1xf32> to vector<8x8xf32>
      %279 = arith.mulf %274, %278 : vector<8x8xf32>
      %280 = arith.truncf %279 : vector<8x8xf32> to vector<8x8xbf16>
      %281 = vector.extract_strided_slice %196 {offsets = [0, 24], sizes = [8, 8], strides = [1, 1]} : vector<8x32xbf16> to vector<8x8xbf16>
      %cst_113 = arith.constant dense<0.000000e+00> : vector<8x8xf32>
      %282 = tpu.matmul %280, %281, %cst_113 {dimension_numbers = #tpu.dot_dimension_numbers<[1], [0], [0], [1], [0, 0, 1, 1], [], []>} : vector<8x8xbf16>, vector<8x8xbf16>, vector<8x8xf32> -> vector<8x8xf32>
      %283 = arith.truncf %282 : vector<8x8xf32> to vector<8x8xbf16>
      %284 = vector.extract_strided_slice %197 {offsets = [24, 0], sizes = [8, 32], strides = [1, 1]} : vector<32x32xbf16> to vector<8x32xbf16>
      %cst_114 = arith.constant dense<0.000000e+00> : vector<8x32xf32>
      %285 = tpu.matmul %283, %284, %cst_114 {dimension_numbers = #tpu.dot_dimension_numbers<[1], [0], [0], [1], [0, 0, 1, 1], [], []>} : vector<8x8xbf16>, vector<8x32xbf16>, vector<8x32xf32> -> vector<8x32xf32>
      %286 = arith.addf %264, %285 : vector<8x32xf32>
      %c0_115 = arith.constant 0 : index
      %c0_116 = arith.constant 0 : index
      %287 = vector.load %arg18[%c0_115, %c0_116] : memref<1x32xf32, #tpu.memory_space<vmem>>, vector<1x32xf32>
      %288 = vector.broadcast %287 : vector<1x32xf32> to vector<8x32xf32>
      %289 = arith.addf %286, %288 : vector<8x32xf32>
      %290 = arith.addf %185, %289 : vector<8x32xf32>
      %cst_117 = arith.constant dense<0.000000e+00> : vector<8xf32>
      %291 = vector.multi_reduction <add>, %290, %cst_117 [1] : vector<8x32xf32> to vector<8xf32>
      %292 = vector.shape_cast %291 : vector<8xf32> to vector<8x1xf32>
      %cst_118 = arith.constant 3.200000e+01 : f32
      %293 = vector.broadcast %cst_118 : f32 to vector<8x1xf32>
      %294 = arith.divf %292, %293 : vector<8x1xf32>
      %295 = vector.broadcast %294 : vector<8x1xf32> to vector<8x32xf32>
      %296 = arith.subf %290, %295 : vector<8x32xf32>
      %297 = arith.mulf %296, %296 : vector<8x32xf32>
      %cst_119 = arith.constant dense<0.000000e+00> : vector<8xf32>
      %298 = vector.multi_reduction <add>, %297, %cst_119 [1] : vector<8x32xf32> to vector<8xf32>
      %299 = vector.shape_cast %298 : vector<8xf32> to vector<8x1xf32>
      %cst_120 = arith.constant 3.200000e+01 : f32
      %300 = vector.broadcast %cst_120 : f32 to vector<8x1xf32>
      %301 = arith.divf %299, %300 : vector<8x1xf32>
      %302 = vector.broadcast %294 : vector<8x1xf32> to vector<8x32xf32>
      %303 = arith.subf %290, %302 : vector<8x32xf32>
      %cst_121 = arith.constant 9.99999974E-6 : f32
      %304 = vector.broadcast %cst_121 : f32 to vector<8x1xf32>
      %305 = arith.addf %301, %304 : vector<8x1xf32>
      %306 = math.rsqrt %305 : vector<8x1xf32>
      %307 = vector.broadcast %306 : vector<8x1xf32> to vector<8x32xf32>
      %308 = arith.mulf %303, %307 : vector<8x32xf32>
      %c0_122 = arith.constant 0 : index
      %c0_123 = arith.constant 0 : index
      %309 = vector.load %arg7[%c0_122, %c0_123] : memref<1x32xf32, #tpu.memory_space<vmem>>, vector<1x32xf32>
      %310 = vector.broadcast %309 : vector<1x32xf32> to vector<8x32xf32>
      %311 = arith.mulf %308, %310 : vector<8x32xf32>
      %c0_124 = arith.constant 0 : index
      %c0_125 = arith.constant 0 : index
      %312 = vector.load %arg8[%c0_124, %c0_125] : memref<1x32xf32, #tpu.memory_space<vmem>>, vector<1x32xf32>
      %313 = vector.broadcast %312 : vector<1x32xf32> to vector<8x32xf32>
      %314 = arith.addf %311, %313 : vector<8x32xf32>
      %c0_126 = arith.constant 0 : index
      %c0_127 = arith.constant 0 : index
      %315 = vector.load %arg19[%c0_126, %c0_127] : memref<32x4xf32, #tpu.memory_space<vmem>>, vector<32x4xf32>
      %cst_128 = arith.constant dense<0.000000e+00> : vector<8x4xf32>
      %316 = tpu.matmul %314, %315, %cst_128 {dimension_numbers = #tpu.dot_dimension_numbers<[1], [0], [0], [1], [0, 0, 1, 1], [], []>} : vector<8x32xf32>, vector<32x4xf32>, vector<8x4xf32> -> vector<8x4xf32>
      %c0_129 = arith.constant 0 : index
      %c0_130 = arith.constant 0 : index
      %317 = vector.load %arg20[%c0_129, %c0_130] : memref<1x4xf32, #tpu.memory_space<vmem>>, vector<1x4xf32>
      %318 = vector.broadcast %317 : vector<1x4xf32> to vector<8x4xf32>
      %319 = arith.addf %316, %318 : vector<8x4xf32>
      %cst_131 = arith.constant 0.000000e+00 : f32
      %320 = vector.broadcast %cst_131 : f32 to vector<8x4xf32>
      %321 = arith.maximumf %319, %320 : vector<8x4xf32>
      %322 = tpu.iota {dimensions = array<i32: 1>} : vector<8x4xi32>
      %cst_132 = arith.constant 0.000000e+00 : f32
      %323 = vector.broadcast %cst_132 : f32 to vector<8x4xf32>
      %cst_133 = arith.constant dense<0xFF800000> : vector<8xf32>
      %324 = vector.multi_reduction <maximumf>, %321, %cst_133 [1] : vector<8x4xf32> to vector<8xf32>
      %325 = vector.shape_cast %324 : vector<8xf32> to vector<8x1xf32>
      %326 = vector.broadcast %325 : vector<8x1xf32> to vector<8x4xf32>
      %327 = arith.cmpf oeq, %321, %326 : vector<8x4xf32>
      %c4_i32 = arith.constant 4 : i32
      %328 = vector.broadcast %c4_i32 : i32 to vector<8x4xi32>
      %329 = arith.select %327, %322, %328 : vector<8x4xi1>, vector<8x4xi32>
      %cst_134 = arith.constant dense<2147483647> : vector<8xi32>
      %330 = vector.multi_reduction <minsi>, %329, %cst_134 [1] : vector<8x4xi32> to vector<8xi32>
      %331 = vector.shape_cast %330 : vector<8xi32> to vector<8x1xi32>
      %332 = vector.broadcast %331 : vector<8x1xi32> to vector<8x4xi32>
      %333 = arith.cmpi eq, %322, %332 : vector<8x4xi32>
      %334 = arith.extui %333 : vector<8x4xi1> to vector<8x4xi32>
      %335 = arith.sitofp %334 : vector<8x4xi32> to vector<8x4xf32>
      %336 = arith.addf %323, %335 : vector<8x4xf32>
      %cst_135 = arith.constant 0.000000e+00 : f32
      %337 = vector.broadcast %cst_135 : f32 to vector<8x4xf32>
      %338 = arith.cmpf ogt, %335, %337 : vector<8x4xf32>
      %cst_136 = arith.constant 0xFF800000 : f32
      %339 = vector.broadcast %cst_136 : f32 to vector<8x4xf32>
      %340 = arith.select %338, %339, %321 : vector<8x4xi1>, vector<8x4xf32>
      %cst_137 = arith.constant dense<0xFF800000> : vector<8xf32>
      %341 = vector.multi_reduction <maximumf>, %340, %cst_137 [1] : vector<8x4xf32> to vector<8xf32>
      %342 = vector.shape_cast %341 : vector<8xf32> to vector<8x1xf32>
      %343 = vector.broadcast %342 : vector<8x1xf32> to vector<8x4xf32>
      %344 = arith.cmpf oeq, %340, %343 : vector<8x4xf32>
      %c4_i32_138 = arith.constant 4 : i32
      %345 = vector.broadcast %c4_i32_138 : i32 to vector<8x4xi32>
      %346 = arith.select %344, %322, %345 : vector<8x4xi1>, vector<8x4xi32>
      %cst_139 = arith.constant dense<2147483647> : vector<8xi32>
      %347 = vector.multi_reduction <minsi>, %346, %cst_139 [1] : vector<8x4xi32> to vector<8xi32>
      %348 = vector.shape_cast %347 : vector<8xi32> to vector<8x1xi32>
      %349 = vector.broadcast %348 : vector<8x1xi32> to vector<8x4xi32>
      %350 = arith.cmpi eq, %322, %349 : vector<8x4xi32>
      %351 = arith.extui %350 : vector<8x4xi1> to vector<8x4xi32>
      %352 = arith.sitofp %351 : vector<8x4xi32> to vector<8x4xf32>
      %353 = arith.addf %336, %352 : vector<8x4xf32>
      %cst_140 = arith.constant 0.000000e+00 : f32
      %354 = vector.broadcast %cst_140 : f32 to vector<8x4xf32>
      %355 = arith.cmpf oeq, %353, %354 : vector<8x4xf32>
      %cst_141 = arith.constant 0xFF800000 : f32
      %356 = vector.broadcast %cst_141 : f32 to vector<8x4xf32>
      %357 = arith.select %355, %356, %321 : vector<8x4xi1>, vector<8x4xf32>
      %cst_142 = arith.constant dense<0xFF800000> : vector<8xf32>
      %358 = vector.multi_reduction <maximumf>, %357, %cst_142 [1] : vector<8x4xf32> to vector<8xf32>
      %359 = vector.shape_cast %358 : vector<8xf32> to vector<8x1xf32>
      %360 = vector.broadcast %359 : vector<8x1xf32> to vector<8x4xf32>
      %361 = arith.subf %357, %360 : vector<8x4xf32>
      %362 = math.exp %361 : vector<8x4xf32>
      %cst_143 = arith.constant dense<0.000000e+00> : vector<8xf32>
      %363 = vector.multi_reduction <add>, %362, %cst_143 [1] : vector<8x4xf32> to vector<8xf32>
      %364 = vector.shape_cast %363 : vector<8xf32> to vector<8x1xf32>
      %365 = tpu.reciprocal %364 {approx = true} : vector<8x1xf32> -> vector<8x1xf32>
      %366 = vector.broadcast %365 : vector<8x1xf32> to vector<8x4xf32>
      %367 = arith.mulf %362, %366 : vector<8x4xf32>
      %c0_144 = arith.constant 0 : index
      %c0_145 = arith.constant 0 : index
      %368 = vector.load %arg26[%c0_144, %c0_145] : memref<8x32xf32, #tpu.memory_space<vmem>>, vector<8x32xf32>
      tpu.vector_store %arg26[%c0_144, %c0_145], %314 {strides = array<i32>} : memref<8x32xf32, #tpu.memory_space<vmem>>, vector<8x32xf32>,
      %369 = arith.mulf %367, %353 : vector<8x4xf32>
      %c0_146 = arith.constant 0 : index
      %c0_147 = arith.constant 0 : index
      %370 = vector.load %arg27[%c0_146, %c0_147] : memref<8x4xf32, #tpu.memory_space<vmem>>, vector<8x4xf32>
      tpu.vector_store %arg27[%c0_146, %c0_147], %369 {strides = array<i32>} : memref<8x4xf32, #tpu.memory_space<vmem>>, vector<8x4xf32>,
      %c0_148 = arith.constant 0 : index
      %c0_149 = arith.constant 0 : index
      %371 = vector.load %arg25[%c0_148, %c0_149] : memref<8x32xf32, #tpu.memory_space<vmem>>, vector<8x32xf32>
      tpu.vector_store %arg25[%c0_148, %c0_149], %314 {strides = array<i32>} : memref<8x32xf32, #tpu.memory_space<vmem>>, vector<8x32xf32>,
    } else {
    }
    %c0 = arith.constant 0 : index
    %c0_1 = arith.constant 0 : index
    %3 = vector.load %arg26[%c0, %c0_1] : memref<8x32xf32, #tpu.memory_space<vmem>>, vector<8x32xf32>
    %4 = tpu.iota {dimensions = array<i32: 1>} : vector<8x4xi32>
    %5 = vector.broadcast %arg1 : i32 to vector<8x4xi32>
    %6 = arith.cmpi eq, %4, %5 : vector<8x4xi32>
    %c0_2 = arith.constant 0 : index
    %c0_3 = arith.constant 0 : index
    %7 = vector.load %arg27[%c0_2, %c0_3] : memref<8x4xf32, #tpu.memory_space<vmem>>, vector<8x4xf32>
    %cst = arith.constant 0.000000e+00 : f32
    %8 = vector.broadcast %cst : f32 to vector<8x4xf32>
    %9 = arith.select %6, %7, %8 : vector<8x4xi1>, vector<8x4xf32>
    %cst_4 = arith.constant dense<0.000000e+00> : vector<8xf32>
    %10 = vector.multi_reduction <add>, %9, %cst_4 [1] : vector<8x4xf32> to vector<8xf32>
    %11 = vector.shape_cast %10 : vector<8xf32> to vector<8x1xf32>
    %12 = arith.truncf %3 : vector<8x32xf32> to vector<8x32xbf16>
    %c0_5 = arith.constant 0 : index
    %c0_6 = arith.constant 0 : index
    %13 = vector.load %arg21[%c0_5, %c0_6] : memref<32x128xbf16, #tpu.memory_space<vmem>>, vector<32x128xbf16>
    %cst_7 = arith.constant dense<0.000000e+00> : vector<8x128xf32>
    %14 = tpu.matmul %12, %13, %cst_7 {dimension_numbers = #tpu.dot_dimension_numbers<[1], [0], [0], [1], [0, 0, 1, 1], [], []>} : vector<8x32xbf16>, vector<32x128xbf16>, vector<8x128xf32> -> vector<8x128xf32>
    %c0_8 = arith.constant 0 : index
    %c0_9 = arith.constant 0 : index
    %15 = vector.load %arg22[%c0_8, %c0_9] : memref<1x128xf32, #tpu.memory_space<vmem>>, vector<1x128xf32>
    %16 = vector.broadcast %15 : vector<1x128xf32> to vector<8x128xf32>
    %17 = arith.addf %14, %16 : vector<8x128xf32>
    %cst_10 = arith.constant 0.000000e+00 : f32
    %18 = vector.broadcast %cst_10 : f32 to vector<8x128xf32>
    %19 = arith.maximumf %17, %18 : vector<8x128xf32>
    %20 = arith.truncf %19 : vector<8x128xf32> to vector<8x128xbf16>
    %c0_11 = arith.constant 0 : index
    %c0_12 = arith.constant 0 : index
    %21 = vector.load %arg23[%c0_11, %c0_12] : memref<128x32xbf16, #tpu.memory_space<vmem>>, vector<128x32xbf16>
    %cst_13 = arith.constant dense<0.000000e+00> : vector<8x32xf32>
    %22 = tpu.matmul %20, %21, %cst_13 {dimension_numbers = #tpu.dot_dimension_numbers<[1], [0], [0], [1], [0, 0, 1, 1], [], []>} : vector<8x128xbf16>, vector<128x32xbf16>, vector<8x32xf32> -> vector<8x32xf32>
    %c0_14 = arith.constant 0 : index
    %c0_15 = arith.constant 0 : index
    %c0_16 = arith.constant 0 : index
    %23 = vector.load %arg24[%c0_14, %c0_15, %c0_16] : memref<1x1x32xf32, #tpu.memory_space<vmem>>, vector<1x1x32xf32>
    %24 = vector.shape_cast %23 : vector<1x1x32xf32> to vector<1x32xf32>
    %25 = vector.broadcast %24 : vector<1x32xf32> to vector<8x32xf32>
    %26 = arith.addf %22, %25 : vector<8x32xf32>
    %c0_17 = arith.constant 0 : index
    %c0_18 = arith.constant 0 : index
    %27 = vector.load %arg25[%c0_17, %c0_18] : memref<8x32xf32, #tpu.memory_space<vmem>>, vector<8x32xf32>
    %28 = vector.broadcast %11 : vector<8x1xf32> to vector<8x32xf32>
    %29 = arith.mulf %28, %26 : vector<8x32xf32>
    %30 = arith.addf %27, %29 : vector<8x32xf32>
    %c0_19 = arith.constant 0 : index
    %c0_20 = arith.constant 0 : index
    %31 = vector.load %arg25[%c0_19, %c0_20] : memref<8x32xf32, #tpu.memory_space<vmem>>, vector<8x32xf32>
    tpu.vector_store %arg25[%c0_19, %c0_20], %30 {strides = array<i32>} : memref<8x32xf32, #tpu.memory_space<vmem>>, vector<8x32xf32>,
    return
  }
  func.func @transform_0(%arg0: i32, %arg1: i32) -> (i32, i32) {
    %c0_i32 = arith.constant 0 : i32
    %c0_i32_0 = arith.constant 0 : i32
    return %arg0, %c0_i32 : i32, i32
  }
  func.func @transform_1(%arg0: i32, %arg1: i32) -> (i32, i32) {
    %c0_i32 = arith.constant 0 : i32
    %c0_i32_0 = arith.constant 0 : i32
    %c0_i32_1 = arith.constant 0 : i32
    return %c0_i32, %c0_i32_0 : i32, i32
  }
  func.func @transform_2(%arg0: i32, %arg1: i32) -> (i32, i32) {
    %c0_i32 = arith.constant 0 : i32
    %c0_i32_0 = arith.constant 0 : i32
    %c0_i32_1 = arith.constant 0 : i32
    return %c0_i32, %c0_i32_0 : i32, i32
  }
  func.func @transform_3(%arg0: i32, %arg1: i32) -> (i32, i32) {
    %c0_i32 = arith.constant 0 : i32
    %c0_i32_0 = arith.constant 0 : i32
    %c0_i32_1 = arith.constant 0 : i32
    return %c0_i32, %c0_i32_0 : i32, i32
  }
  func.func @transform_4(%arg0: i32, %arg1: i32) -> (i32, i32) {
    %c0_i32 = arith.constant 0 : i32
    %c0_i32_0 = arith.constant 0 : i32
    %c0_i32_1 = arith.constant 0 : i32
    return %c0_i32, %c0_i32_0 : i32, i32
  }
  func.func @transform_5(%arg0: i32, %arg1: i32) -> (i32, i32) {
    %c0_i32 = arith.constant 0 : i32
    %c0_i32_0 = arith.constant 0 : i32
    %c0_i32_1 = arith.constant 0 : i32
    return %c0_i32, %c0_i32_0 : i32, i32
  }
  func.func @transform_6(%arg0: i32, %arg1: i32) -> (i32, i32) {
    %c0_i32 = arith.constant 0 : i32
    %c0_i32_0 = arith.constant 0 : i32
    %c0_i32_1 = arith.constant 0 : i32
    return %c0_i32, %c0_i32_0 : i32, i32
  }
  func.func @transform_7(%arg0: i32, %arg1: i32) -> (i32, i32) {
    %c0_i32 = arith.constant 0 : i32
    %c0_i32_0 = arith.constant 0 : i32
    %c0_i32_1 = arith.constant 0 : i32
    return %c0_i32, %c0_i32_0 : i32, i32
  }
  func.func @transform_8(%arg0: i32, %arg1: i32) -> (i32, i32) {
    %c0_i32 = arith.constant 0 : i32
    %c0_i32_0 = arith.constant 0 : i32
    %c0_i32_1 = arith.constant 0 : i32
    return %c0_i32, %c0_i32_0 : i32, i32
  }
  func.func @transform_9(%arg0: i32, %arg1: i32) -> (i32, i32) {
    %c0_i32 = arith.constant 0 : i32
    %c0_i32_0 = arith.constant 0 : i32
    %c0_i32_1 = arith.constant 0 : i32
    return %c0_i32, %c0_i32_0 : i32, i32
  }
  func.func @transform_10(%arg0: i32, %arg1: i32) -> (i32, i32) {
    %c0_i32 = arith.constant 0 : i32
    %c0_i32_0 = arith.constant 0 : i32
    %c0_i32_1 = arith.constant 0 : i32
    return %c0_i32, %c0_i32_0 : i32, i32
  }
  func.func @transform_11(%arg0: i32, %arg1: i32) -> (i32, i32) {
    %c0_i32 = arith.constant 0 : i32
    %c0_i32_0 = arith.constant 0 : i32
    %c0_i32_1 = arith.constant 0 : i32
    return %c0_i32, %c0_i32_0 : i32, i32
  }
  func.func @transform_12(%arg0: i32, %arg1: i32) -> (i32, i32) {
    %c0_i32 = arith.constant 0 : i32
    %c0_i32_0 = arith.constant 0 : i32
    %c0_i32_1 = arith.constant 0 : i32
    return %c0_i32, %c0_i32_0 : i32, i32
  }
  func.func @transform_13(%arg0: i32, %arg1: i32) -> (i32, i32) {
    %c0_i32 = arith.constant 0 : i32
    %c0_i32_0 = arith.constant 0 : i32
    %c0_i32_1 = arith.constant 0 : i32
    return %c0_i32, %c0_i32_0 : i32, i32
  }
  func.func @transform_14(%arg0: i32, %arg1: i32) -> (i32, i32) {
    %c0_i32 = arith.constant 0 : i32
    %c0_i32_0 = arith.constant 0 : i32
    %c0_i32_1 = arith.constant 0 : i32
    return %c0_i32, %c0_i32_0 : i32, i32
  }
  func.func @transform_15(%arg0: i32, %arg1: i32) -> (i32, i32) {
    %c0_i32 = arith.constant 0 : i32
    %c0_i32_0 = arith.constant 0 : i32
    %c0_i32_1 = arith.constant 0 : i32
    return %c0_i32, %c0_i32_0 : i32, i32
  }
  func.func @transform_16(%arg0: i32, %arg1: i32) -> (i32, i32) {
    %c0_i32 = arith.constant 0 : i32
    %c0_i32_0 = arith.constant 0 : i32
    %c0_i32_1 = arith.constant 0 : i32
    return %c0_i32, %c0_i32_0 : i32, i32
  }
  func.func @transform_17(%arg0: i32, %arg1: i32) -> (i32, i32) {
    %c0_i32 = arith.constant 0 : i32
    %c0_i32_0 = arith.constant 0 : i32
    %c0_i32_1 = arith.constant 0 : i32
    return %c0_i32, %c0_i32_0 : i32, i32
  }
  func.func @transform_18(%arg0: i32, %arg1: i32) -> (i32, i32) {
    %c0_i32 = arith.constant 0 : i32
    %c0_i32_0 = arith.constant 0 : i32
    %c0_i32_1 = arith.constant 0 : i32
    return %c0_i32, %c0_i32_0 : i32, i32
  }
  func.func @transform_19(%arg0: i32, %arg1: i32) -> (i32, i32) {
    %c0_i32 = arith.constant 0 : i32
    %c0_i32_0 = arith.constant 0 : i32
    return %c0_i32, %arg1 : i32, i32
  }
  func.func @transform_20(%arg0: i32, %arg1: i32) -> (i32, i32) {
    %c0_i32 = arith.constant 0 : i32
    %c0_i32_0 = arith.constant 0 : i32
    return %c0_i32, %arg1 : i32, i32
  }
  func.func @transform_21(%arg0: i32, %arg1: i32) -> (i32, i32) {
    %c0_i32 = arith.constant 0 : i32
    %c0_i32_0 = arith.constant 0 : i32
    return %arg1, %c0_i32 : i32, i32
  }
  func.func @transform_22(%arg0: i32, %arg1: i32) -> (i32, i32, i32) {
    %c0_i32 = arith.constant 0 : i32
    %c0_i32_0 = arith.constant 0 : i32
    %c0_i32_1 = arith.constant 0 : i32
    return %arg1, %c0_i32, %c0_i32_0 : i32, i32, i32
  }
  func.func @transform_23(%arg0: i32, %arg1: i32) -> (i32, i32) {
    %c0_i32 = arith.constant 0 : i32
    %c0_i32_0 = arith.constant 0 : i32
    return %arg0, %c0_i32 : i32, i32
  }
}

</mosaic_0001>

<bundles_post_ra>
// kernel: sparse_moe_transformer_decoder.5
= control target key start
LH: loop header
LB: loop body
LE: loop exit
PB: predicated region body
PF: predicated region fallthrough
CT: control target
= control target key end

     0   :  { %s487_s12 = smov 0   ;;  %s489_s13 = smov 0   ;;  %s529_s0 = inlined_call_operand.vmem [shape: f32[16,32], index: 0, kind: input, shape index: {}]   ;;  %s530_s1 = inlined_call_operand.vmem [shape: bf16[32,128], index: 1, kind: input, shape index: {}]   ;;  %s531_s2 = inlined_call_operand.vmem [shape: f32[1,128], index: 2, kind: input, shape index: {}]   ;;  %s532_s3 = inlined_call_operand.vmem [shape: f32[16,128], index: 3, kind: output, shape index: {}]  }
   0x1   :  { %s491_s14 = smov 0  }
   0x2 LB: > { %s25_s15 = sadd.s32 1, %s459_s13  ;;  %p393_p0 = scmp.ge.s32.totalorder %s463_s14, 1  ;;  %s463_s14 = sphi %s491_s14, %s13_s14   ;;  %s459_s13 = sphi %s489_s13, %s534_s13   ;;  %s455_s12 = sphi %s487_s12, %s533_s12  }
   0x3   : > { %p27_p1 = scmp.ge.s32.totalorder %s25_s15, 2  ;;  %p167_p2 = scmp.lt.s32.totalorder %s463_s14, 3 }
   0x5   : > { %s536_s15 = smov (%p27_p1, %s25_s15), 0  ;;  %p168_p3 = pnand %p393_p0, %p167_p2 }
   0x6   : > { %v439_v0 = vld [vmem:[%s530_s1] sm:$0xff] (!%p168_p3)   ;;  %v465_v1 = vmov (!%p168_p3), 0.0   ;;  %v440_v2 = vld [vmem:[%s530_s1 + $0x8] sm:$0xff] (!%p168_p3)   ;;  %vm466_vm0 = vmmov (!%p168_p3), 0   ;;  %p199_p4 = scmp.lt.s32.totalorder (!%p168_p3), %s455_s12, 1  ;;  %vm243_vm1 = vcmask (!%p168_p3), 261120  }
   0x7   : > { %171 = sbr.rel (%p168_p3) target bundleno = 235 (0xeb), region = 32  ;;  %405 = vmatprep.subr.bf16.mxu0 (!%p168_p3), %v465_v1  ;;  %409 = vmatprep.mubr.msk.bf16.mxu0 (!%p168_p3), %vm466_vm0, %v465_v1  ;;  %v396_v5 = vld [vmem:[%s531_s2] ss:$0 sm:$0xff] (!%p168_p3) }
   0x8   : > { %406 = vmatpush3.bf16.msra.mxu0 (!%p168_p3), %v439_v0 }
   0x9   : > { %407 = vmatprep.subr.bf16.mxu0 (!%p168_p3), %v465_v1 }
   0xc   : > { %408 = vmatpush3.bf16.msra.mxu0 (!%p168_p3), %v440_v2 }
   0xe   : > { %s538_s12 = smov (!%p199_p4, %s455_s12), 1 }
   0xf   : > { %s394_s20 = sshll.u32 %s538_s12, 3 }
  0x10   : > { %s202_s23 = scalar_lea.vmem %s529_s0, %s394_s20  ;;  %s216_s28 = scalar_lea.vmem %s532_s3, %s394_s20 }
  0x11   : > { %v218_v3 = vld [vmem:[%s202_s23] sm:$0xff] }
  0x12   : > { %v219_v4 = vpack.c.bf16 %v218_v3, %v218_v3 }
  0x14   : > { %410 = vmatmul.mubr.msk.bf16.vlgmr.msra.gmra.mrb[0].mxu0 %vm243_vm1, %v219_v4 }
  0xe7   : > { %v281_v6 = vpop.f32.mrb[0].mxu0 }
  0xe8   : > { %v282_v7 = vadd.f32 %v396_v5, %v281_v6  ;;  %v411_v8 = vpop.f32.mrb[1].mxu0 }
  0xe9   : > { %v284_v9 = vpop.f32.mrb[2].mxu0 }
  0xea   : > { %287 = vst [vmem:[%s216_s28] sm:$0xff] %v282_v7  ;;  %v412_v10 = vpop.f32.mrb[3].mxu0 }
  0xeb PF: > { %s13_s14 = sadd.s32 1, %s463_s14   ;;  %s533_s12 = smov %s459_s13 }
  0xec   : > { %p10_p5 = scmp.ge.s32.totalorder %s13_s14, 4   ;;  %s534_s13 = smov %s536_s15 }
  0xee   :  { %12 = sbr.rel (!%p10_p5) target bundleno = 2 (0x2), region = 68 }

// kernel: sparse_moe_transformer_decoder.3
= control target key start
LH: loop header
LB: loop body
LE: loop exit
PB: predicated region body
PF: predicated region fallthrough
CT: control target
= control target key end

     0   :  { %s4259_s0 = inlined_call_operand.vmem [shape: f32[16,32], index: 0, kind: input, shape index: {}]   ;;  %s4260_s1 = inlined_call_operand.vmem [shape: f32[1,32], index: 1, kind: input, shape index: {}]   ;;  %s4261_s2 = inlined_call_operand.vmem [shape: f32[1,32], index: 2, kind: input, shape index: {}]   ;;  %s4262_s3 = inlined_call_operand.vmem [shape: f32[1,32], index: 3, kind: input, shape index: {}]   ;;  %s4263_s4 = inlined_call_operand.vmem [shape: f32[1,32], index: 4, kind: input, shape index: {}]   ;;  %s4264_s5 = inlined_call_operand.vmem [shape: f32[1,32], index: 5, kind: input, shape index: {}]   ;;  %s4265_s6 = inlined_call_operand.vmem [shape: f32[1,32], index: 6, kind: input, shape index: {}]   ;;  %s4266_s7 = inlined_call_operand.vmem [shape: bf16[32,32], index: 7, kind: input, shape index: {}]   ;;  %s4267_s8 = inlined_call_operand.vmem [shape: bf16[32,32], index: 8, kind: input, shape index: {}]   ;;  %s4268_s9 = inlined_call_operand.vmem [shape: bf16[32,32], index: 9, kind: input, shape index: {}]   ;;  %s4269_s10 = inlined_call_operand.vmem [shape: bf16[32,32], index: 10, kind: input, shape index: {}]   ;;  %s4270_s11 = inlined_call_operand.vmem [shape: f32[1,32], index: 11, kind: input, shape index: {}]   ;;  %s4271_s12 = inlined_call_operand.vmem [shape: bf16[32,32], index: 12, kind: input, shape index: {}]   ;;  %s4272_s13 = inlined_call_operand.vmem [shape: bf16[32,32], index: 13, kind: input, shape index: {}]   ;;  %s4273_s14 = inlined_call_operand.vmem [shape: bf16[32,32], index: 14, kind: input, shape index: {}]   ;;  %s4274_s15 = inlined_call_operand.vmem [shape: bf16[32,32], index: 15, kind: input, shape index: {}]   ;;  %s4275_s16 = inlined_call_operand.vmem [shape: f32[1,32], index: 16, kind: input, shape index: {}]   ;;  %s4276_s17 = inlined_call_operand.vmem [shape: f32[32,4], index: 17, kind: input, shape index: {}]   ;;  %s4277_s18 = inlined_call_operand.vmem [shape: f32[1,4], index: 18, kind: input, shape index: {}]   ;;  %s4278_s19 = inlined_call_operand.vmem [shape: bf16[32,512], index: 19, kind: input, shape index: {}]   ;;  %s4279_s20 = inlined_call_operand.vmem [shape: f32[1,512], index: 20, kind: input, shape index: {}]   ;;  %s4280_s21 = inlined_call_operand.vmem [shape: bf16[512,32], index: 21, kind: input, shape index: {}]   ;;  %s4281_s22 = inlined_call_operand.vmem [shape: f32[4,1,32], index: 22, kind: input, shape index: {}]   ;;  %s4282_s23 = inlined_call_operand.vmem [shape: f32[16,32], index: 23, kind: output, shape index: {}]  }
   0x1   :  { %4292 = sst [smem:[#allocation12_spill]] %s4259_s0 }
   0x2   :  { %4293 = sst [smem:[#allocation13_spill]] %s4260_s1 }
   0x3   :  { %4294 = sst [smem:[#allocation14_spill]] %s4261_s2 }
   0x4   :  { %4295 = sst [smem:[#allocation15_spill]] %s4262_s3 }
   0x5   :  { %4296 = sst [smem:[#allocation16_spill]] %s4263_s4 }
   0x6   :  { %4297 = sst [smem:[#allocation17_spill]] %s4264_s5 }
   0x7   :  { %4298 = sst [smem:[#allocation18_spill]] %s4265_s6 }
   0x8   :  { %4299 = sst [smem:[#allocation19_spill]] %s4266_s7 }
   0x9   :  { %4300 = sst [smem:[#allocation20_spill]] %s4273_s14 }
   0xa   :  { %4301 = sst [smem:[#allocation21_spill]] %s4274_s15 }
   0xb   :  { %4302 = sst [smem:[#allocation22_spill]] %s4275_s16 }
   0xc   :  { %4303 = sst [smem:[#allocation23_spill]] %s4276_s17 }
   0xd   :  { %4304 = sst [smem:[#allocation24_spill]] %s4277_s18 }
   0xe   :  { %4305 = sst [smem:[#allocation25_spill]] %s4278_s19 }
   0xf   :  { %s3757_s4 = smov 0   ;;  %s3759_s30 = smov 0  }
  0x10   :  { %s3761_s24 = smov 0   ;;  %s3763_s25 = smov 0  }
  0x11   :  { %s3765_s5 = smov 0   ;;  %s3767_s1 = smov 0  }
  0x12   :  { %s3769_s26 = smov 0  }
  0x13 LB: > { %4306 = sst [smem:[#allocation5_spill]] %s3607_s30  ;;  %s42_s2 = sadd.s32 1, %s3619_s5  ;;  %s3627_s26 = sphi %s3769_s26, %s33_s26   ;;  %s3623_s1 = sphi %s3767_s1, %s4337_s1   ;;  %s3619_s5 = sphi %s3765_s5, %s4336_s5   ;;  %s3615_s25 = sphi %s3763_s25, %s4335_s25   ;;  %s3611_s24 = sphi %s3761_s24, %s4334_s24   ;;  %s3607_s30 = sphi %s3759_s30, %s4333_s30   ;;  %s3603_s4 = sphi %s3757_s4, %s4332_s4  }
  0x14   : > { %4307 = sst [smem:[#allocation6_spill]] %s3619_s5  ;;  %s45_s6 = sadd.s32 1, %s3623_s1 }
  0x15   : > { %4308 = sst [smem:[#allocation7_spill]] %s3623_s1  ;;  %p43_p0 = scmp.ge.s32.totalorder %s42_s2, 4 }
  0x16   : > { %4309 = sst [smem:[#allocation8_spill]] %s3627_s26  ;;  %s456_s27 = sadd.s32 1, %s3607_s30 }
  0x17   : > { %p463_p1 = scmp.ne.s32.totalorder %s3607_s30, %s3603_s4  ;;  %p464_p2 = scmp.eq.s32.totalorder %s3627_s26, 0 }
  0x18   : > { %s4339_s2 = smov (%p43_p0, %s42_s2), 0  ;;  %s4341_s6 = smov (!%p43_p0, %s45_s6), %s3623_s1 }
  0x19   : > { %4310 = sst [smem:[#allocation9_spill]] %s4339_s2  ;;  %s453_s7 = ssub.s32 %s3619_s5, %s4339_s2 }
  0x1a   : > { %p465_p3 = por %p464_p2, %p463_p1  ;;  %p47_p4 = scmp.ge.s32.totalorder %s4341_s6, 2 }
  0x1b   : > { %p454_p5 = scmp.eq.s32.totalorder %s453_s7, 0  ;;  %p3046_p6 = scmp.ge.s32.totalorder %s3627_s26, 8 }
  0x1c   : > { %s4343_s6 = smov (%p47_p4, %s4341_s6), 0 }
  0x1d   : > { %4311 = sst [smem:[#allocation10_spill]] %s4343_s6  ;;  %647 = sbr.rel (%p3046_p6) target bundleno = 49 (0x31), region = 88 }
  0x1e   : > { %s3806_s28 = scalar_select %p454_p5, %s3607_s30, %s456_s27  }
  0x20   : > { %4312 = sst [smem:[#allocation11_spill]] %s3806_s28 }
  0x24   : > { %657 = sbr.rel (!%p465_p3) target bundleno = 49 (0x31), region = 96  ;;  %s659_s29 = sand.u32 (%p465_p3), 1, %s3607_s30  }
  0x25   : > { %s3048_s3 = sshll.u32 (%p465_p3), %s3619_s5, 2  ;;  %s3047_s0 = sshll.u32 (%p465_p3), %s659_s29, 4 }
  0x26   : > { %s4313_s19 = sld [smem:[#allocation25_spill]] (%p465_p3)  ;;  %s661_s7 = scalar_lea.vmem (%p465_p3), [#allocation4], %s3047_s0 }
  0x2c   : > { %s663_s2 = scalar_lea.vmem %s4313_s19, %s3048_s3 }
  0x2d   : > { %v679_v0 = vld [vmem:[%s663_s2] sm:$0xf]  ;;  %v681_v1 = vld [vmem:[%s663_s2 + $0x10] sm:$0xf] }
  0x2e   : > { %680 = vst [vmem:[%s661_s7] sm:$0xf] %v679_v0  ;;  %682 = vst [vmem:[%s661_s7 + $0x4] sm:$0xf] %v681_v1  ;;  %v683_v2 = vld [vmem:[%s663_s2 + $0x20] sm:$0xf] }
  0x2f   : > { %v685_v3 = vld [vmem:[%s663_s2 + $0x30] sm:$0xf]  ;;  %684 = vst [vmem:[%s661_s7 + $0x8] sm:$0xf] %v683_v2 }
  0x30   : > { %686 = vst [vmem:[%s661_s7 + $0xc] sm:$0xf] %v685_v3 }
  0x31 PF: > { %p3049_p7 = scmp.ge.s32.totalorder %s3627_s26, 1  ;;  %p737_p8 = scmp.lt.s32.totalorder %s3627_s26, 9 }
  0x33   : > { %p738_p9 = pnand %p3049_p7, %p737_p8 }
  0x34   : > { %s744_s17 = sand.u32 (!%p738_p9), 1, %s3603_s4   ;;  %p821_p10 = scmp.lt.s32.totalorder (!%p738_p9), %s3615_s25, 1 }
  0x35   : > { %741 = sbr.rel (%p738_p9) target bundleno = 8047 (0x1f6f), region = 149  ;;  %s3818_s18 = sshll.u32 (!%p738_p9), %s744_s17, 4 }
  0x36   : > { %p825_p11 = scmp.lt.s32.totalorder (!%p738_p9), %s3611_s24, 3  ;;  %s3052_s2 = sshll.u32 (!%p738_p9), %s3611_s24, 4 }
  0x37   : > { %p829_p12 = scmp.lt.s32.totalorder (!%p738_p9), %s3052_s2, 63  ;;  %s4314_s7 = sld [smem:[#allocation12_spill]] (!%p738_p9) }
  0x38   : > { %s746_s0 = scalar_lea.vmem (!%p738_p9), [#allocation4], %s3818_s18  ;;  %p3055_p13 = scmp.ne.s32.totalorder (!%p738_p9), %s3611_s24, 0 }
  0x3c   : > { %s4345_s25 = smov (!%p821_p10, %s3615_s25), 1  ;;  %s4347_s2 = smov (!%p829_p12, %s3052_s2), 63 }
  0x3d   : > { %s3824_s27 = scalar_select %p825_p11, %s3611_s24, 3 }
  0x3e   : > { %s3051_s29 = sshll.u32 %s4345_s25, 3  ;;  %s3053_s25 = sshll.u32 %s4347_s2, 2  ;;  %vm847_vm0 = vcmask (!%p3055_p13), 261120   ;;  %v3510_v12 = vld [vmem:[%s4267_s8] sm:$0xff] (!%p3055_p13)   ;;  %v3629_v13 = vmov (!%p3055_p13), 0.0   ;;  %v3512_v15 = vld [vmem:[%s4267_s8 + $0x8] sm:$0xff] (!%p3055_p13)  }
  0x3f   : > { %s824_s19 = scalar_lea.vmem %s4314_s7, %s3051_s29  ;;  %s827_s4 = scalar_lea.vmem %s4279_s20, %s3824_s27  ;;  %3208 = vmatprep.subr.bf16.mxu0 (!%p3055_p13), %v3629_v13  ;;  %3216 = vmatprep.subr.bf16.mxu1 (!%p3055_p13), %v3629_v13  ;;  %vm3630_vm1 = vmmov (!%p3055_p13), 0   ;;  %v3513_v25 = vld [vmem:[%s4268_s9] sm:$0xff] (!%p3055_p13)   ;;  %v3514_v27 = vld [vmem:[%s4268_s9 + $0x8] sm:$0xff] (!%p3055_p13)   ;;  %vm1057_vm2 = vcmask (!%p3055_p13), 64512   ;;  %vm1120_vm3 = vcmask (!%p3055_p13), 1043456   ;;  %vm2667_vm4 = vcmask (!%p3055_p13), 31744  }
  0x40   : > { %s836_s28 = scalar_lea.vmem %s4281_s22, %s3824_s27  ;;  %s3840_s16 = scalar_lea.vmem %s4282_s23, %s3051_s29  ;;  %v3849_v4 = vld [vmem:[%s824_s19] sm:$0xff] (!%p3055_p13)  ;;  %3217 = vmatpush3.bf16.msra.mxu1 (!%p3055_p13), %v3510_v12  ;;  %3212 = vmatprep.mubr.msk.bf16.mxu0 (!%p3055_p13), %vm3630_vm1, %v3629_v13 }
  0x41   : > { %s3845_s3 = scalar_lea.vmem %s4280_s21, %s3053_s25  ;;  %845 = sbr.rel (%p3055_p13) target bundleno = 7601 (0x1db1), region = 157  ;;  %v848_v5 = vsel (!%p3055_p13), %vm847_vm0, %v3849_v4, 0.0  ;;  %3218 = vmatprep.subr.bf16.mxu1 (!%p3055_p13), %v3629_v13  ;;  %3220 = vmatprep.mubr.msk.bf16.mxu1 (!%p3055_p13), %vm3630_vm1, %v3629_v13 }
  0x42   : > { %849 = vadd.xlane.f32.xlu0 (!%p3055_p13), %v848_v5  ;;  %s4315_s30 = sld [smem:[#allocation19_spill]] (!%p3055_p13)  ;;  %s4317_s25 = sld [smem:[#allocation13_spill]] (!%p3055_p13) }
  0x43   : > { %s3631_s2 = smov (!%p3055_p13), 120   ;;  %s3632_s29 = smov (!%p3055_p13), 112  }
  0x44   : > { %3219 = vmatpush3.bf16.msra.mxu1 (!%p3055_p13), %v3512_v15  ;;  %s3633_s15 = smov (!%p3055_p13), 104   ;;  %s4320_s5 = sld [smem:[#allocation16_spill]] (!%p3055_p13) }
  0x45   : > { %3232 = vmatprep.subr.bf16.mxu1 (!%p3055_p13), %v3629_v13  ;;  %s4321_s26 = sld [smem:[#allocation20_spill]] (!%p3055_p13)  ;;  %s4326_s1 = sld [smem:[#allocation23_spill]] (!%p3055_p13) }
  0x48   : > { %s4316_s6 = smov %s4315_s30  ;;  %v3509_v11 = vld [vmem:[%s4315_s30] sm:$0xff]   ;;  %s4318_s30 = sld [smem:[#allocation14_spill]] }
  0x49   : > { %3209 = vmatpush3.bf16.msra.mxu0 %v3509_v11  ;;  %v3511_v14 = vld [vmem:[%s4316_s6 + $0x8] sm:$0xff]   ;;  %v3056_v20 = vld [vmem:[%s4317_s25] ss:$0 sm:$0xff]  ;;  %v1054_v11 = vld [vmem:[%s4269_s10 + $0x4] sm:$0xf]  ;;  %s4319_s25 = sld [smem:[#allocation15_spill]] }
  0x4a   : > { %3210 = vmatprep.subr.bf16.mxu0 %v3629_v13  ;;  %v1284_v12 = vsel %vm1120_vm3, %v1054_v11, 0 }
  0x4b   : > { %s4322_s7 = smov %s4321_s26 }
  0x4d   : > { %3211 = vmatpush3.bf16.msra.mxu0 %v3511_v14 }
  0x4e   : > { %3224 = vmatprep.subr.bf16.mxu0 %v3629_v13  ;;  %v3057_v22 = vld [vmem:[%s4318_s30] ss:$0 sm:$0xff]  ;;  %s4325_s30 = sld [smem:[#allocation22_spill]] }
  0xcf   : > { %v850_v6 = vpop.xlane.xlu0 %849 }
  0xd0   : > { %v852_v7 = vmul.f32 0.03125, %v850_v6 }
  0xd2   : > { %v853_v8 = vsub.f32 %v3849_v4, %v852_v7 }
  0xd4   : > { %v854_v9 = vmul.f32 %v853_v8, %v853_v8 }
  0xd6   : > { %v855_v10 = vsel %vm847_vm0, %v854_v9, 0.0 }
  0xd7   : > { %856 = vadd.xlane.f32.xlu0 %v855_v10 }
 0x164   : > { %v857_v16 = vpop.xlane.xlu0 %856 }
 0x165   : > { %v858_v17 = vmul.f32 0.03125, %v857_v16 }
 0x167   : > { %v859_v18 = vadd.f32 1e-05, %v858_v17 }
 0x169   : > { %3521 = vrsqrt.f32 %v859_v18  ;;  %v1053_v18 = vld [vmem:[%s4269_s10] sm:$0xf] }
 0x173   : > { %v3522_v19 = vpop.eup %3521 }
 0x174   : > { %v861_v21 = vmul.f32 %v3522_v19, %v853_v8 }
 0x176   : > { %v869_v23 = vmul.f32 %v3056_v20, %v861_v21  ;;  %v1330_v21 = vsel %vm1120_vm3, %v1053_v18, 0 }
 0x178   : > { %v3883_v24 = vadd.f32 %v3057_v22, %v869_v23 }
 0x17a   : > { %v878_v26 = vpack.c.bf16 %v3883_v24, %v3883_v24 }
 0x17c   : > { %3213 = vmatmul.mubr.msk.bf16.vlgmr.msra.gmra.mrb[0].mxu0 %vm847_vm0, %v878_v26  ;;  %3221 = vmatmul.mubr.msk.bf16.vlgmr.msra.gmra.mrb[0].mxu1 %vm847_vm0, %v878_v26 }
 0x17d   : > { %3225 = vmatpush3.bf16.msra.mxu0 %v3513_v25  ;;  %3228 = vmatprep.mubr.msk.bf16.mxu0 %vm3630_vm1, %v3629_v13 }
 0x17e   : > { %3226 = vmatprep.subr.bf16.mxu0 %v3629_v13  ;;  %3234 = vmatprep.mubr.msk.bf16.mxu1 %vm3630_vm1, %v3629_v13 }
 0x181   : > { %3227 = vmatpush3.bf16.msra.mxu0 %v3514_v27 }
 0x182   : > { %3238 = vmatprep.subr.bf16.mxu0 %v3629_v13 }
 0x184   : > { %3229 = vmatmul.mubr.msk.bf16.vlgmr.msra.gmra.mrb[4].mxu0 %vm847_vm0, %v878_v26 }
 0x185   : > { %3240 = vmatprep.mubr.msk.bf16.mxu0 %vm3630_vm1, %v3629_v13 }
 0x24f   : > { %v932_v28 = vpop.f32.mrb[0].mxu0  ;;  %v989_v29 = vpop.f32.mrb[0].mxu1 }
 0x250   : > { %v3904_v30 = vpack.c.bf16 %v989_v29, %v989_v29  ;;  %v3214_v31 = vpop.f32.mrb[1].mxu0  ;;  %v3222_v32 = vpop.f32.mrb[1].mxu1  ;;  %v3910_v38 = vpack.c.bf16 %v932_v28, %v932_v28 }
 0x251   : > { %v935_v33 = vpop.f32.mrb[2].mxu0  ;;  %v992_v34 = vpop.f32.mrb[2].mxu1 }
 0x252   : > { %1169 = vrot.lane.b32.xlu1 %v3904_v30, %s3631_s2  ;;  %v3215_v35 = vpop.f32.mrb[3].mxu0  ;;  %v3223_v36 = vpop.f32.mrb[3].mxu1  ;;  %v1062_v37 = vsel %vm1057_vm2, %v3904_v30, 0 }
 0x253   : > { %3233 = vmatpush3.bf16.xpose.msra.mxu1 %v1062_v37 }
 0x254   : > { %3244 = vmatprep.subr.bf16.mxu1 %v3629_v13 }
 0x256   : > { %1166 = vrot.lane.b32.xlu1 %v3910_v38, %s3631_s2 }
 0x257   : > { %v1046_v39 = vpop.f32.mrb[4].mxu0 }
 0x258   : > { %v3915_v40 = vpack.c.bf16 %v1046_v39, %v1046_v39  ;;  %v3230_v41 = vpop.f32.mrb[5].mxu0 }
 0x259   : > { %v1049_v42 = vpop.f32.mrb[6].mxu0 }
 0x25a   : > { %v3231_v43 = vpop.f32.mrb[7].mxu0  ;;  %3235 = vmatmul.mubr.msk.bf16.vlgmr.msra.gmra.mrb[4].mxu1 %vm1057_vm2, %v3910_v38  ;;  %v1122_v44 = vsel %vm1120_vm3, %v3915_v40, 0 }
 0x25b   : > { %3239 = vmatpush3.bf16.msra.mxu0 %v1122_v44  ;;  %3246 = vmatprep.mubr.msk.bf16.mxu1 %vm3630_vm1, %v3629_v13 }
 0x25c   : > { %3250 = vmatprep.subr.bf16.mxu0 %v3629_v13 }
 0x2c4   : > { %v1170_v45 = vpop.permute.xlu1 %1169 }
 0x2c5   : > { %v1175_v46 = vsel %vm1057_vm2, %v1170_v45, 0 }
 0x2c6   : > { %3245 = vmatpush3.bf16.xpose.msra.mxu1 %v1175_v46 }
 0x2c7   : > { %3256 = vmatprep.subr.bf16.mxu1 %v3629_v13 }
 0x2c8   : > { %v1167_v47 = vpop.permute.xlu1 %1166 }
 0x2cd   : > { %3247 = vmatmul.mubr.msk.bf16.vlgmr.msra.gmra.mrb[8].mxu1 %vm1057_vm2, %v1167_v47 }
 0x2ce   : > { %3258 = vmatprep.mubr.msk.bf16.mxu1 %vm3630_vm1, %v3629_v13  ;;  %3257 = vmatpush3.bf16.msra.mxu1 %v1284_v12 }
 0x2cf   : > { %3268 = vmatprep.subr.bf16.mxu1 %v3629_v13 }
 0x32d   : > { %v1098_v48 = vpop.f32.mrb[4].mxu1 }
 0x32e   : > { %v1104_v49 = vmul.f32 0.35355338, %v1098_v48  ;;  %v3236_v50 = vpop.f32.mrb[5].mxu1 }
 0x32f   : > { %v1101_v51 = vpop.f32.mrb[6].mxu1 }
 0x330   : > { %v3237_v52 = vpop.f32.mrb[7].mxu1  ;;  %v1105_v53 = vsel %vm1057_vm2, %v1104_v49, -inf }
 0x331   : > { %1106 = vmax.xlane.f32.xlu0 %v1105_v53 }
 0x3a0   : > { %v1211_v54 = vpop.f32.mrb[8].mxu1 }
 0x3a1   : > { %v1217_v55 = vmul.f32 0.35355338, %v1211_v54  ;;  %v3248_v56 = vpop.f32.mrb[9].mxu1 }
 0x3a2   : > { %v1214_v57 = vpop.f32.mrb[10].mxu1 }
 0x3a3   : > { %v3249_v58 = vpop.f32.mrb[11].mxu1  ;;  %v1218_v59 = vsel %vm1057_vm2, %v1217_v55, -inf }
 0x3a4   : > { %1219 = vmax.xlane.f32.xlu1 %v1218_v59 }
 0x3b5   : > { %1372 = vrot.lane.b32.xlu1 %v3910_v38, %s3632_s29 }
 0x3be   : > { %v1107_v60 = vpop.xlane.xlu0 %1106 }
 0x3bf   : > { %v1108_v61 = vsub.f32 %v1104_v49, %v1107_v60 }
 0x3c1   : > { %v1109_v62 = vmul.f32 1.442695, %v1108_v61 }
 0x3c3   : > { %3523 = vpow2.f32 %v1109_v62 }
 0x3cd   : > { %v3524_v63 = vpop.eup %3523 }
 0x3ce   : > { %v1111_v0 = vsel %vm1057_vm2, %v3524_v63, 0.0 }
 0x3cf   : > { %1112 = vadd.xlane.f32.xlu0 %v1111_v0 }
 0x431   : > { %v1220_v1 = vpop.xlane.xlu1 %1219 }
 0x432   : > { %v1221_v2 = vsub.f32 %v1217_v55, %v1220_v1 }
 0x434   : > { %v1222_v3 = vmul.f32 1.442695, %v1221_v2 }
 0x435   : > { %v1373_v36 = vpop.permute.xlu1 %1372 }
 0x436   : > { %3525 = vpow2.f32 %v1222_v3 }
 0x440   : > { %v3526_v5 = vpop.eup %3525 }
 0x441   : > { %v1224_v6 = vsel %vm1057_vm2, %v3526_v5, 0.0 }
 0x442   : > { %1225 = vadd.xlane.f32.xlu0 %v1224_v6 }
 0x458   : > { %1231 = vrot.lane.b32.xlu0 %v3915_v40, %s3631_s2 }
 0x45c   : > { %v1113_v7 = vpop.xlane.xlu0 %1112  ;;  %1374 = vrot.lane.b32.xlu0 %v3904_v30, %s3632_s29 }
 0x45d   : > { %3527 = vrcp.f32 %v1113_v7 }
 0x467   : > { %v3528_v8 = vpop.eup %3527 }
 0x468   : > { %v1115_v9 = vmul.f32 %v3528_v8, %v3524_v63 }
 0x46a   : > { %v1116_v10 = vpack.c.bf16 %v1115_v9, %v1115_v9 }
 0x46c   : > { %3241 = vmatmul.mubr.msk.bf16.vlgmr.msra.gmra.mrb[8].mxu0 %vm1057_vm2, %v1116_v10 }
 0x46d   : > { %3252 = vmatprep.mubr.msk.bf16.mxu0 %vm3630_vm1, %v3629_v13 }
 0x4cf   : > { %v1226_v14 = vpop.xlane.xlu0 %1225 }
 0x4d0   : > { %3529 = vrcp.f32 %v1226_v14 }
 0x4d3   : > { %v1232_v15 = vpop.permute.xlu0 %1231 }
 0x4d4   : > { %v1237_v16 = vsel %vm1120_vm3, %v1232_v15, 0 }
 0x4d5   : > { %3251 = vmatpush3.bf16.msra.mxu0 %v1237_v16 }
 0x4d6   : > { %3262 = vmatprep.subr.bf16.mxu0 %v3629_v13 }
 0x4d7   : > { %v1375_v28 = vpop.permute.xlu0 %1374 }
 0x4d8   : > { %v1380_v34 = vsel %vm1057_vm2, %v1375_v28, 0 }
 0x4da   : > { %v3530_v17 = vpop.eup %3529 }
 0x4db   : > { %v1228_v19 = vmul.f32 %v3530_v17, %v3526_v5 }
 0x4dd   : > { %v1229_v20 = vpack.c.bf16 %v1228_v19, %v1228_v19 }
 0x4df   : > { %3253 = vmatmul.mubr.msk.bf16.vlgmr.msra.gmra.mrb[12].mxu0 %vm1057_vm2, %v1229_v20 }
 0x4e0   : > { %3263 = vmatpush3.bf16.msra.mxu0 %v1330_v21  ;;  %3264 = vmatprep.mubr.msk.bf16.mxu0 %vm3630_vm1, %v3629_v13 }
 0x4e1   : > { %3274 = vmatprep.subr.bf16.mxu0 %v3629_v13 }
 0x53f   : > { %v1158_v22 = vpop.f32.mrb[8].mxu0 }
 0x540   : > { %v1164_v23 = vpack.c.bf16 %v1158_v22, %v1158_v22  ;;  %v3242_v25 = vpop.f32.mrb[9].mxu0 }
 0x541   : > { %v1161_v26 = vpop.f32.mrb[10].mxu0  ;;  %v1056_v25 = vld [vmem:[%s4269_s10 + $0xc] sm:$0xf] }
 0x542   : > { %v3243_v27 = vpop.f32.mrb[11].mxu0  ;;  %3265 = vmatmul.mubr.msk.bf16.vlgmr.msra.gmra.mrb[16].mxu0 %vm1057_vm2, %v1164_v23 }
 0x543   : > { %3276 = vmatprep.mubr.msk.bf16.mxu0 %vm3630_vm1, %v3629_v13 }
 0x5b2   : > { %v1273_v29 = vpop.f32.mrb[12].mxu0 }
 0x5b3   : > { %v1279_v31 = vpack.c.bf16 %v1273_v29, %v1273_v29  ;;  %v3254_v32 = vpop.f32.mrb[13].mxu0 }
 0x5b4   : > { %v1276_v33 = vpop.f32.mrb[14].mxu0 }
 0x5b5   : > { %v3255_v35 = vpop.f32.mrb[15].mxu0  ;;  %3259 = vmatmul.mubr.msk.bf16.vlgmr.msra.gmra.mrb[12].mxu1 %vm1057_vm2, %v1279_v31 }
 0x5b6   : > { %3269 = vmatpush3.bf16.xpose.msra.mxu1 %v1380_v34  ;;  %3270 = vmatprep.mubr.msk.bf16.mxu1 %vm3630_vm1, %v3629_v13 }
 0x5b7   : > { %3280 = vmatprep.subr.bf16.mxu1 %v3629_v13 }
 0x5bd   : > { %3271 = vmatmul.mubr.msk.bf16.vlgmr.msra.gmra.mrb[16].mxu1 %vm1057_vm2, %v1373_v36 }
 0x5be   : > { %3282 = vmatprep.mubr.msk.bf16.mxu1 %vm3630_vm1, %v3629_v13 }
 0x615   : > { %v1366_v37 = vpop.f32.mrb[16].mxu0 }
 0x616   : > { %v3266_v39 = vpop.f32.mrb[17].mxu0 }
 0x617   : > { %v1369_v41 = vpop.f32.mrb[18].mxu0 }
 0x618   : > { %v3267_v42 = vpop.f32.mrb[19].mxu0 }
 0x688   : > { %v1320_v43 = vpop.f32.mrb[12].mxu1 }
 0x689   : > { %v3968_v44 = vadd.f32 %v1366_v37, %v1320_v43  ;;  %v3260_v45 = vpop.f32.mrb[13].mxu1 }
 0x68a   : > { %v1323_v46 = vpop.f32.mrb[14].mxu1 }
 0x68b   : > { %v3261_v47 = vpop.f32.mrb[15].mxu1 }
 0x690   : > { %v1416_v48 = vpop.f32.mrb[16].mxu1 }
 0x691   : > { %v1422_v49 = vmul.f32 0.35355338, %v1416_v48  ;;  %v3272_v50 = vpop.f32.mrb[17].mxu1 }
 0x692   : > { %v1419_v51 = vpop.f32.mrb[18].mxu1 }
 0x693   : > { %v3273_v52 = vpop.f32.mrb[19].mxu1  ;;  %v1423_v53 = vsel %vm1057_vm2, %v1422_v49, -inf }
 0x694   : > { %1424 = vmax.xlane.f32.xlu0 %v1423_v53 }
 0x6aa   : > { %1435 = vrot.lane.b32.xlu0 %v3915_v40, %s3632_s29 }
 0x6ae   : > { %1531 = vrot.lane.b32.xlu0 %v3910_v38, %s3633_s15 }
 0x721   : > { %v1425_v54 = vpop.xlane.xlu0 %1424 }
 0x722   : > { %v1426_v55 = vsub.f32 %v1422_v49, %v1425_v54 }
 0x724   : > { %v1427_v56 = vmul.f32 1.442695, %v1426_v55 }
 0x725   : > { %v1436_v57 = vpop.permute.xlu0 %1435 }
 0x726   : > { %3531 = vpow2.f32 %v1427_v56  ;;  %v1441_v58 = vsel %vm1120_vm3, %v1436_v57, 0  ;;  %v3515_v57 = vld [vmem:[%s4272_s13] sm:$0xff]  }
 0x727   : > { %3275 = vmatpush3.bf16.msra.mxu0 %v1441_v58  ;;  %v1729_v58 = vpack.c.bf16 %v3849_v4, %v3849_v4 }
 0x728   : > { %3286 = vmatprep.subr.bf16.mxu0 %v3629_v13 }
 0x729   : > { %v1532_v2 = vpop.permute.xlu0 %1531 }
 0x730   : > { %v3532_v59 = vpop.eup %3531 }
 0x731   : > { %v1429_v60 = vsel %vm1057_vm2, %v3532_v59, 0.0 }
 0x732   : > { %1430 = vadd.xlane.f32.xlu1 %v1429_v60  ;;  %v3518_v60 = vld [vmem:[%s4271_s12 + $0x8] sm:$0xff]  }
 0x743   : > { %1533 = vrot.lane.b32.xlu1 %v3904_v30, %s3633_s15  ;;  %v1055_v30 = vld [vmem:[%s4269_s10 + $0x8] sm:$0xf] }
 0x744   : > { %v1488_v3 = vsel %vm1120_vm3, %v1055_v30, 0 }
 0x745   : > { %3281 = vmatpush3.bf16.msra.mxu1 %v1488_v3 }
 0x746   : > { %3292 = vmatprep.subr.bf16.mxu1 %v3629_v13 }
 0x7bf   : > { %v1431_v61 = vpop.xlane.xlu1 %1430 }
 0x7c0   : > { %3533 = vrcp.f32 %v1431_v61 }
 0x7c3   : > { %v1534_v63 = vpop.permute.xlu1 %1533 }
 0x7c4   : > { %v1539_v1 = vsel %vm1057_vm2, %v1534_v63, 0  ;;  %v3080_v63 = vld [vmem:[%s4319_s25] ss:$0 sm:$0xff]  ;;  %s4329_s25 = sld [smem:[#allocation18_spill]] }
 0x7ca   : > { %v3534_v38 = vpop.eup %3533 }
 0x7cb   : > { %v1433_v62 = vmul.f32 %v3534_v38, %v3532_v59  ;;  %v3517_v59 = vld [vmem:[%s4271_s12] sm:$0xff]  }
 0x7cd   : > { %v1434_v0 = vpack.c.bf16 %v1433_v62, %v1433_v62 }
 0x7cf   : > { %3277 = vmatmul.mubr.msk.bf16.vlgmr.msra.gmra.mrb[20].mxu0 %vm1057_vm2, %v1434_v0 }
 0x7d0   : > { %3287 = vmatpush3.bf16.xpose.msra.mxu0 %v1539_v1  ;;  %3288 = vmatprep.mubr.msk.bf16.mxu0 %vm3630_vm1, %v3629_v13  ;;  %v3081_v1 = vld [vmem:[%s4320_s5] ss:$0 sm:$0xff]  ;;  %s4323_s5 = sld [smem:[#allocation21_spill]] }
 0x7d1   : > { %3298 = vmatprep.subr.bf16.mxu0 %v3629_v13 }
 0x7d6   : > { %s4324_s19 = smov %s4323_s5 }
 0x7d7   : > { %3289 = vmatmul.mubr.msk.bf16.vlgmr.msra.gmra.mrb[24].mxu0 %vm1057_vm2, %v1532_v2 }
 0x7d8   : > { %3300 = vmatprep.mubr.msk.bf16.mxu0 %vm3630_vm1, %v3629_v13 }
 0x8a2   : > { %v1477_v5 = vpop.f32.mrb[20].mxu0 }
 0x8a3   : > { %v1483_v6 = vpack.c.bf16 %v1477_v5, %v1477_v5  ;;  %v3278_v7 = vpop.f32.mrb[21].mxu0 }
 0x8a4   : > { %v1480_v8 = vpop.f32.mrb[22].mxu0 }
 0x8a5   : > { %v3279_v9 = vpop.f32.mrb[23].mxu0  ;;  %3283 = vmatmul.mubr.msk.bf16.vlgmr.msra.gmra.mrb[20].mxu1 %vm1057_vm2, %v1483_v6 }
 0x8a6   : > { %3294 = vmatprep.mubr.msk.bf16.mxu1 %vm3630_vm1, %v3629_v13 }
 0x8aa   : > { %v1575_v10 = vpop.f32.mrb[24].mxu0 }
 0x8ab   : > { %v1581_v11 = vmul.f32 0.35355338, %v1575_v10  ;;  %v3290_v12 = vpop.f32.mrb[25].mxu0 }
 0x8ac   : > { %v1578_v14 = vpop.f32.mrb[26].mxu0 }
 0x8ad   : > { %v3291_v15 = vpop.f32.mrb[27].mxu0  ;;  %v1582_v16 = vsel %vm1057_vm2, %v1581_v11, -inf }
 0x8ae   : > { %1583 = vmax.xlane.f32.xlu0 %v1582_v16 }
 0x8c4   : > { %1594 = vrot.lane.b32.xlu0 %v3915_v40, %s3633_s15  ;;  %v1647_v40 = vsel %vm1120_vm3, %v1056_v25, 0 }
 0x8c5   : > { %3299 = vmatpush3.bf16.msra.mxu0 %v1647_v40 }
 0x8c6   : > { %3312 = vmatprep.subr.bf16.mxu0 %v3629_v13 }
 0x93b   : > { %v1584_v17 = vpop.xlane.xlu0 %1583 }
 0x93c   : > { %v1585_v18 = vsub.f32 %v1581_v11, %v1584_v17 }
 0x93e   : > { %v1586_v19 = vmul.f32 1.442695, %v1585_v18 }
 0x93f   : > { %v1595_v20 = vpop.permute.xlu0 %1594 }
 0x940   : > { %3535 = vpow2.f32 %v1586_v19  ;;  %v1600_v21 = vsel %vm1120_vm3, %v1595_v20, 0  ;;  %v3519_v19 = vld [vmem:[%s4321_s26] sm:$0xff]   ;;  %v3520_v20 = vld [vmem:[%s4322_s7 + $0x8] sm:$0xff]  }
 0x941   : > { %3293 = vmatpush3.bf16.msra.mxu1 %v1600_v21 }
 0x942   : > { %3304 = vmatprep.subr.bf16.mxu1 %v3629_v13 }
 0x94a   : > { %v3536_v22 = vpop.eup %3535 }
 0x94b   : > { %v1588_v23 = vsel %vm1057_vm2, %v3536_v22, 0.0 }
 0x94c   : > { %1589 = vadd.xlane.f32.xlu1 %v1588_v23 }
 0x978   : > { %v1524_v26 = vpop.f32.mrb[20].mxu1 }
 0x979   : > { %v1530_v27 = vadd.f32 %v1524_v26, %v3968_v44  ;;  %v3284_v28 = vpop.f32.mrb[21].mxu1  ;;  %v3079_v44 = vld [vmem:[%s4270_s11] ss:$0 sm:$0xff] }
 0x97a   : > { %v1527_v29 = vpop.f32.mrb[22].mxu1 }
 0x97b   : > { %v3285_v31 = vpop.f32.mrb[23].mxu1 }
 0x9d9   : > { %v1590_v32 = vpop.xlane.xlu1 %1589 }
 0x9da   : > { %3537 = vrcp.f32 %v1590_v32 }
 0x9e4   : > { %v3538_v33 = vpop.eup %3537 }
 0x9e5   : > { %v1592_v34 = vmul.f32 %v3538_v33, %v3536_v22 }
 0x9e7   : > { %v1593_v35 = vpack.c.bf16 %v1592_v34, %v1592_v34 }
 0x9e9   : > { %3295 = vmatmul.mubr.msk.bf16.vlgmr.msra.gmra.mrb[24].mxu1 %vm1057_vm2, %v1593_v35 }
 0x9ea   : > { %3308 = vmatprep.mubr.msk.bf16.mxu1 %vm3630_vm1, %v3629_v13  ;;  %3305 = vmatpush3.bf16.msra.mxu1 %v3517_v59 }
 0x9eb   : > { %3306 = vmatprep.subr.bf16.mxu1 %v3629_v13 }
 0x9ee   : > { %3307 = vmatpush3.bf16.msra.mxu1 %v3518_v60 }
 0x9ef   : > { %3320 = vmatprep.subr.bf16.mxu1 %v3629_v13 }
 0xabc   : > { %v1636_v36 = vpop.f32.mrb[24].mxu1 }
 0xabd   : > { %v1642_v37 = vpack.c.bf16 %v1636_v36, %v1636_v36  ;;  %v3296_v39 = vpop.f32.mrb[25].mxu1 }
 0xabe   : > { %v1639_v41 = vpop.f32.mrb[26].mxu1 }
 0xabf   : > { %v3297_v42 = vpop.f32.mrb[27].mxu1  ;;  %3301 = vmatmul.mubr.msk.bf16.vlgmr.msra.gmra.mrb[28].mxu0 %vm1057_vm2, %v1642_v37 }
 0xac0   : > { %3316 = vmatprep.mubr.msk.bf16.mxu0 %vm3630_vm1, %v3629_v13  ;;  %3313 = vmatpush3.bf16.msra.mxu0 %v3515_v57  ;;  %v1908_v57 = vld [vmem:[%s4323_s5 + $0x4] sm:$0xf] }
 0xac1   : > { %3314 = vmatprep.subr.bf16.mxu0 %v3629_v13 }
 0xb92   : > { %v1683_v43 = vpop.f32.mrb[28].mxu0 }
 0xb93   : > { %v1689_v45 = vadd.f32 %v1683_v43, %v1530_v27  ;;  %v3302_v46 = vpop.f32.mrb[29].mxu0 }
 0xb94   : > { %v1686_v47 = vpop.f32.mrb[30].mxu0 }
 0xb95   : > { %v1697_v48 = vadd.f32 %v3079_v44, %v1689_v45  ;;  %v3303_v49 = vpop.f32.mrb[31].mxu0 }
 0xb97   : > { %v1698_v50 = vadd.f32 %v1697_v48, %v3883_v24  ;;  %v3516_v24 = vld [vmem:[%s4272_s13 + $0x8] sm:$0xff]  }
 0xb98   : > { %3315 = vmatpush3.bf16.msra.mxu0 %v3516_v24  ;;  %v2136_v24 = vsel %vm1120_vm3, %v1908_v57, 0 }
 0xb99   : > { %v1699_v51 = vsel %vm847_vm0, %v1698_v50, 0.0  ;;  %3328 = vmatprep.subr.bf16.mxu0 %v3629_v13 }
 0xb9a   : > { %1700 = vadd.xlane.f32.xlu1 %v1699_v51 }
 0xb9b   : > { %3317 = vmatmul.mubr.msk.bf16.vlgmr.msra.gmra.mrb[32].mxu0 %vm847_vm0, %v1729_v58 }
 0xb9c   : > { %3330 = vmatprep.mubr.msk.bf16.mxu0 %vm3630_vm1, %v3629_v13 }
 0xc27   : > { %v1701_v52 = vpop.xlane.xlu1 %1700 }
 0xc28   : > { %v1702_v53 = vmul.f32 0.03125, %v1701_v52 }
 0xc2a   : > { %v1703_v54 = vsub.f32 %v1698_v50, %v1702_v53 }
 0xc2c   : > { %v1704_v55 = vmul.f32 %v1703_v54, %v1703_v54 }
 0xc2e   : > { %v1705_v56 = vsel %vm847_vm0, %v1704_v55, 0.0 }
 0xc2f   : > { %1706 = vadd.xlane.f32.xlu1 %v1705_v56 }
 0xc6e   : > { %v1843_v5 = vpop.f32.mrb[32].mxu0 }
 0xc6f   : > { %v4054_v6 = vpack.c.bf16 %v1843_v5, %v1843_v5  ;;  %v3318_v7 = vpop.f32.mrb[33].mxu0 }
 0xc70   : > { %v1846_v8 = vpop.f32.mrb[34].mxu0 }
 0xc71   : > { %v3319_v9 = vpop.f32.mrb[35].mxu0  ;;  %2021 = vrot.lane.b32.xlu0 %v4054_v6, %s3631_s2  ;;  %v1915_v10 = vsel %vm1057_vm2, %v4054_v6, 0 }
 0xc72   : > { %3329 = vmatpush3.bf16.xpose.msra.mxu0 %v1915_v10 }
 0xc73   : > { %3340 = vmatprep.subr.bf16.mxu0 %v3629_v13 }
 0xcbc   : > { %v1707_v4 = vpop.xlane.xlu1 %1706 }
 0xcbd   : > { %v1708_v61 = vmul.f32 0.03125, %v1707_v4 }
 0xcbf   : > { %v1709_v38 = vadd.f32 1e-05, %v1708_v61  ;;  %v1907_v61 = vld [vmem:[%s4324_s19] sm:$0xf] }
 0xcc1   : > { %3539 = vrsqrt.f32 %v1709_v38 }
 0xccb   : > { %v3540_v62 = vpop.eup %3539 }
 0xccc   : > { %v1711_v0 = vmul.f32 %v3540_v62, %v1703_v54 }
 0xcce   : > { %v1719_v2 = vmul.f32 %v3080_v63, %v1711_v0  ;;  %v2182_v63 = vsel %vm1120_vm3, %v1907_v61, 0 }
 0xcd0   : > { %v4047_v30 = vadd.f32 %v3081_v1, %v1719_v2 }
 0xcd2   : > { %v1728_v3 = vpack.c.bf16 %v4047_v30, %v4047_v30 }
 0xcd4   : > { %3309 = vmatmul.mubr.msk.bf16.vlgmr.msra.gmra.mrb[28].mxu1 %vm847_vm0, %v1728_v3 }
 0xcd5   : > { %3324 = vmatprep.mubr.msk.bf16.mxu1 %vm3630_vm1, %v3629_v13  ;;  %3321 = vmatpush3.bf16.msra.mxu1 %v3519_v19 }
 0xcd6   : > { %3322 = vmatprep.subr.bf16.mxu1 %v3629_v13 }
 0xcd9   : > { %3323 = vmatpush3.bf16.msra.mxu1 %v3520_v20 }
 0xcda   : > { %3334 = vmatprep.subr.bf16.mxu1 %v3629_v13 }
 0xcdc   : > { %3325 = vmatmul.mubr.msk.bf16.vlgmr.msra.gmra.mrb[32].mxu1 %vm847_vm0, %v1729_v58 }
 0xcdd   : > { %3336 = vmatprep.mubr.msk.bf16.mxu1 %vm3630_vm1, %v3629_v13 }
 0xce3   : > { %v2022_v11 = vpop.permute.xlu0 %2021 }
 0xce4   : > { %v2027_v16 = vsel %vm1057_vm2, %v2022_v11, 0 }
 0xda7   : > { %v1783_v12 = vpop.f32.mrb[28].mxu1 }
 0xda8   : > { %v4061_v14 = vpack.c.bf16 %v1783_v12, %v1783_v12  ;;  %v3310_v15 = vpop.f32.mrb[29].mxu1 }
 0xda9   : > { %v1786_v17 = vpop.f32.mrb[30].mxu1 }
 0xdaa   : > { %2018 = vrot.lane.b32.xlu1 %v4061_v14, %s3631_s2  ;;  %v3311_v18 = vpop.f32.mrb[31].mxu1  ;;  %3331 = vmatmul.mubr.msk.bf16.vlgmr.msra.gmra.mrb[36].mxu0 %vm1057_vm2, %v4061_v14 }
 0xdab   : > { %3341 = vmatpush3.bf16.xpose.msra.mxu0 %v2027_v16  ;;  %3342 = vmatprep.mubr.msk.bf16.mxu0 %vm3630_vm1, %v3629_v13 }
 0xdac   : > { %3352 = vmatprep.subr.bf16.mxu0 %v3629_v13 }
 0xdaf   : > { %v1900_v39 = vpop.f32.mrb[32].mxu1 }
 0xdb0   : > { %v3326_v41 = vpop.f32.mrb[33].mxu1  ;;  %v4090_v46 = vpack.c.bf16 %v1900_v39, %v1900_v39 }
 0xdb1   : > { %v1903_v42 = vpop.f32.mrb[34].mxu1 }
 0xdb2   : > { %v3327_v43 = vpop.f32.mrb[35].mxu1  ;;  %v1974_v47 = vsel %vm1120_vm3, %v4090_v46, 0 }
 0xdb3   : > { %3335 = vmatpush3.bf16.msra.mxu1 %v1974_v47 }
 0xdb4   : > { %3346 = vmatprep.subr.bf16.mxu1 %v3629_v13 }
 0xe1c   : > { %v2019_v21 = vpop.permute.xlu1 %2018 }
 0xe1d   : > { %3343 = vmatmul.mubr.msk.bf16.vlgmr.msra.gmra.mrb[40].mxu0 %vm1057_vm2, %v2019_v21 }
 0xe1e   : > { %3354 = vmatprep.mubr.msk.bf16.mxu0 %vm3630_vm1, %v3629_v13  ;;  %3353 = vmatpush3.bf16.msra.mxu0 %v2136_v24 }
 0xe1f   : > { %3364 = vmatprep.subr.bf16.mxu0 %v3629_v13 }
 0xe7d   : > { %v1951_v22 = vpop.f32.mrb[36].mxu0 }
 0xe7e   : > { %v1957_v23 = vmul.f32 0.35355338, %v1951_v22  ;;  %v3332_v25 = vpop.f32.mrb[37].mxu0 }
 0xe7f   : > { %v1954_v40 = vpop.f32.mrb[38].mxu0 }
 0xe80   : > { %v3333_v26 = vpop.f32.mrb[39].mxu0  ;;  %v1958_v27 = vsel %vm1057_vm2, %v1957_v23, -inf }
 0xe81   : > { %1959 = vmax.xlane.f32.xlu0 %v1958_v27 }
 0xef0   : > { %v2063_v28 = vpop.f32.mrb[40].mxu0 }
 0xef1   : > { %v2069_v29 = vmul.f32 0.35355338, %v2063_v28  ;;  %v3344_v31 = vpop.f32.mrb[41].mxu0 }
 0xef2   : > { %v2066_v32 = vpop.f32.mrb[42].mxu0 }
 0xef3   : > { %v3345_v33 = vpop.f32.mrb[43].mxu0  ;;  %v2070_v34 = vsel %vm1057_vm2, %v2069_v29, -inf }
 0xef4   : > { %2071 = vmax.xlane.f32.xlu1 %v2070_v34 }
 0xf05   : > { %2226 = vrot.lane.b32.xlu1 %v4054_v6, %s3632_s29 }
 0xf0e   : > { %v1960_v35 = vpop.xlane.xlu0 %1959 }
 0xf0f   : > { %v1961_v36 = vsub.f32 %v1957_v23, %v1960_v35 }
 0xf11   : > { %v1962_v37 = vmul.f32 1.442695, %v1961_v36 }
 0xf13   : > { %3541 = vpow2.f32 %v1962_v37 }
 0xf1d   : > { %v3542_v44 = vpop.eup %3541 }
 0xf1e   : > { %v1964_v45 = vsel %vm1057_vm2, %v3542_v44, 0.0 }
 0xf1f   : > { %1965 = vadd.xlane.f32.xlu0 %v1964_v45 }
 0xf81   : > { %v2072_v48 = vpop.xlane.xlu1 %2071 }
 0xf82   : > { %v2073_v49 = vsub.f32 %v2069_v29, %v2072_v48 }
 0xf84   : > { %v2074_v50 = vmul.f32 1.442695, %v2073_v49 }
 0xf85   : > { %v2227_v7 = vpop.permute.xlu1 %2226 }
 0xf86   : > { %3543 = vpow2.f32 %v2074_v50  ;;  %v2232_v12 = vsel %vm1057_vm2, %v2227_v7, 0 }
 0xf90   : > { %v3544_v51 = vpop.eup %3543 }
 0xf91   : > { %v2076_v52 = vsel %vm1057_vm2, %v3544_v51, 0.0 }
 0xf92   : > { %2077 = vadd.xlane.f32.xlu0 %v2076_v52 }
 0xfa8   : > { %2083 = vrot.lane.b32.xlu0 %v4090_v46, %s3631_s2 }
 0xfac   : > { %v1966_v53 = vpop.xlane.xlu0 %1965  ;;  %2224 = vrot.lane.b32.xlu0 %v4061_v14, %s3632_s29 }
 0xfad   : > { %3545 = vrcp.f32 %v1966_v53 }
 0xfb7   : > { %v3546_v54 = vpop.eup %3545 }
 0xfb8   : > { %v1968_v55 = vmul.f32 %v3546_v54, %v3542_v44 }
 0xfba   : > { %v1969_v56 = vpack.c.bf16 %v1968_v55, %v1968_v55 }
 0xfbc   : > { %3337 = vmatmul.mubr.msk.bf16.vlgmr.msra.gmra.mrb[36].mxu1 %vm1057_vm2, %v1969_v56 }
 0xfbd   : > { %3348 = vmatprep.mubr.msk.bf16.mxu1 %vm3630_vm1, %v3629_v13 }
0x101f   : > { %v2078_v58 = vpop.xlane.xlu0 %2077 }
0x1020   : > { %3547 = vrcp.f32 %v2078_v58 }
0x1023   : > { %v2084_v59 = vpop.permute.xlu0 %2083 }
0x1024   : > { %v2089_v60 = vsel %vm1120_vm3, %v2084_v59, 0 }
0x1025   : > { %3347 = vmatpush3.bf16.msra.mxu1 %v2089_v60 }
0x1026   : > { %3358 = vmatprep.subr.bf16.mxu1 %v3629_v13 }
0x1027   : > { %v2225_v16 = vpop.permute.xlu0 %2224 }
0x102a   : > { %v3548_v4 = vpop.eup %3547 }
0x102b   : > { %v2080_v38 = vmul.f32 %v3548_v4, %v3544_v51 }
0x102d   : > { %v2081_v62 = vpack.c.bf16 %v2080_v38, %v2080_v38 }
0x102f   : > { %3349 = vmatmul.mubr.msk.bf16.vlgmr.msra.gmra.mrb[40].mxu1 %vm1057_vm2, %v2081_v62 }
0x1030   : > { %3359 = vmatpush3.bf16.msra.mxu1 %v2182_v63  ;;  %3360 = vmatprep.mubr.msk.bf16.mxu1 %vm3630_vm1, %v3629_v13  ;;  %v1910_v63 = vld [vmem:[%s4324_s19 + $0xc] sm:$0xf] }
0x1031   : > { %3370 = vmatprep.subr.bf16.mxu1 %v3629_v13 }
0x108f   : > { %v2010_v0 = vpop.f32.mrb[36].mxu1 }
0x1090   : > { %v2016_v1 = vpack.c.bf16 %v2010_v0, %v2010_v0  ;;  %v3338_v2 = vpop.f32.mrb[37].mxu1  ;;  %v2499_v0 = vsel %vm1120_vm3, %v1910_v63, 0 }
0x1091   : > { %v2013_v3 = vpop.f32.mrb[38].mxu1 }
0x1092   : > { %v3339_v5 = vpop.f32.mrb[39].mxu1  ;;  %3361 = vmatmul.mubr.msk.bf16.vlgmr.msra.gmra.mrb[44].mxu1 %vm1057_vm2, %v2016_v1 }
0x1093   : > { %3372 = vmatprep.mubr.msk.bf16.mxu1 %vm3630_vm1, %v3629_v13 }
0x1102   : > { %v2125_v8 = vpop.f32.mrb[40].mxu1 }
0x1103   : > { %v2131_v9 = vpack.c.bf16 %v2125_v8, %v2125_v8  ;;  %v3350_v10 = vpop.f32.mrb[41].mxu1 }
0x1104   : > { %v2128_v11 = vpop.f32.mrb[42].mxu1 }
0x1105   : > { %v3351_v15 = vpop.f32.mrb[43].mxu1  ;;  %3355 = vmatmul.mubr.msk.bf16.vlgmr.msra.gmra.mrb[44].mxu0 %vm1057_vm2, %v2131_v9 }
0x1106   : > { %3365 = vmatpush3.bf16.xpose.msra.mxu0 %v2232_v12  ;;  %3366 = vmatprep.mubr.msk.bf16.mxu0 %vm3630_vm1, %v3629_v13 }
0x1107   : > { %3376 = vmatprep.subr.bf16.mxu0 %v3629_v13 }
0x110d   : > { %3367 = vmatmul.mubr.msk.bf16.vlgmr.msra.gmra.mrb[48].mxu0 %vm1057_vm2, %v2225_v16 }
0x110e   : > { %3378 = vmatprep.mubr.msk.bf16.mxu0 %vm3630_vm1, %v3629_v13 }
0x1165   : > { %v2218_v17 = vpop.f32.mrb[44].mxu1 }
0x1166   : > { %v3362_v18 = vpop.f32.mrb[45].mxu1 }
0x1167   : > { %v2221_v19 = vpop.f32.mrb[46].mxu1 }
0x1168   : > { %v3363_v20 = vpop.f32.mrb[47].mxu1 }
0x11d8   : > { %v2172_v21 = vpop.f32.mrb[44].mxu0 }
0x11d9   : > { %v4129_v22 = vadd.f32 %v2218_v17, %v2172_v21  ;;  %v3356_v23 = vpop.f32.mrb[45].mxu0  ;;  %v3103_v21 = vld [vmem:[%s4325_s30] ss:$0 sm:$0xff]  ;;  %s4330_s30 = sld [smem:[#allocation24_spill]] }
0x11da   : > { %v2175_v25 = vpop.f32.mrb[46].mxu0 }
0x11db   : > { %v3357_v40 = vpop.f32.mrb[47].mxu0 }
0x11e0   : > { %v2268_v26 = vpop.f32.mrb[48].mxu0 }
0x11e1   : > { %v2274_v27 = vmul.f32 0.35355338, %v2268_v26  ;;  %v3368_v28 = vpop.f32.mrb[49].mxu0 }
0x11e2   : > { %v2271_v29 = vpop.f32.mrb[50].mxu0 }
0x11e3   : > { %v3369_v31 = vpop.f32.mrb[51].mxu0  ;;  %v2275_v32 = vsel %vm1057_vm2, %v2274_v27, -inf }
0x11e4   : > { %2276 = vmax.xlane.f32.xlu0 %v2275_v32 }
0x11fa   : > { %2287 = vrot.lane.b32.xlu0 %v4090_v46, %s3632_s29  ;;  %s4327_s29 = smov %s4326_s1 }
0x11fe   : > { %2383 = vrot.lane.b32.xlu0 %v4061_v14, %s3633_s15 }
0x1271   : > { %v2277_v33 = vpop.xlane.xlu0 %2276 }
0x1272   : > { %v2278_v34 = vsub.f32 %v2274_v27, %v2277_v33 }
0x1274   : > { %v2279_v35 = vmul.f32 1.442695, %v2278_v34 }
0x1275   : > { %v2288_v36 = vpop.permute.xlu0 %2287 }
0x1276   : > { %3549 = vpow2.f32 %v2279_v35  ;;  %v2293_v37 = vsel %vm1120_vm3, %v2288_v36, 0  ;;  %v2580_v35 = vld [vmem:[%s4326_s1] sm:$0xff]  ;;  %v2581_v36 = vld [vmem:[%s4327_s29 + $0x8] sm:$0xff]  ;;  %s4328_s1 = sld [smem:[#allocation17_spill]] }
0x1277   : > { %3371 = vmatpush3.bf16.msra.mxu1 %v2293_v37  ;;  %v3440_v37 = vpack.c.bf16 %v2581_v36, %v2580_v35 }
0x1278   : > { %3382 = vmatprep.subr.bf16.mxu1 %v3629_v13 }
0x1279   : > { %v2384_v48 = vpop.permute.xlu0 %2383 }
0x1280   : > { %v3550_v39 = vpop.eup %3549 }
0x1281   : > { %v2281_v41 = vsel %vm1057_vm2, %v3550_v39, 0.0 }
0x1282   : > { %2282 = vadd.xlane.f32.xlu1 %v2281_v41  ;;  %v2583_v41 = vld [vmem:[%s4327_s29 + $0x18] sm:$0xff] }
0x1293   : > { %2385 = vrot.lane.b32.xlu1 %v4054_v6, %s3633_s15  ;;  %v1909_v6 = vld [vmem:[%s4324_s19 + $0x8] sm:$0xf] }
0x1294   : > { %v2340_v49 = vsel %vm1120_vm3, %v1909_v6, 0  ;;  %v3105_v6 = vld [vmem:[%s4329_s25] ss:$0 sm:$0xff] }
0x1295   : > { %3377 = vmatpush3.bf16.msra.mxu0 %v2340_v49 }
0x1296   : > { %3388 = vmatprep.subr.bf16.mxu0 %v3629_v13 }
0x130f   : > { %v2283_v42 = vpop.xlane.xlu1 %2282 }
0x1310   : > { %3551 = vrcp.f32 %v2283_v42 }
0x1313   : > { %v2386_v44 = vpop.permute.xlu1 %2385 }
0x1314   : > { %v2391_v47 = vsel %vm1057_vm2, %v2386_v44, 0 }
0x131a   : > { %v3552_v14 = vpop.eup %3551 }
0x131b   : > { %v2285_v43 = vmul.f32 %v3552_v14, %v3550_v39  ;;  %v2582_v39 = vld [vmem:[%s4327_s29 + $0x10] sm:$0xff] }
0x131c   : > { %v3443_v42 = vpack.c.bf16 %v2583_v41, %v2582_v39 }
0x131d   : > { %v2286_v45 = vpack.c.bf16 %v2285_v43, %v2285_v43 }
0x131f   : > { %3373 = vmatmul.mubr.msk.bf16.vlgmr.msra.gmra.mrb[48].mxu1 %vm1057_vm2, %v2286_v45 }
0x1320   : > { %3383 = vmatpush3.bf16.xpose.msra.mxu1 %v2391_v47  ;;  %3384 = vmatprep.mubr.msk.bf16.mxu1 %vm3630_vm1, %v3629_v13  ;;  %v3104_v47 = vld [vmem:[%s4328_s1] ss:$0 sm:$0xff] }
0x1321   : > { %3394 = vmatprep.subr.bf16.mxu1 %v3629_v13 }
0x1327   : > { %3385 = vmatmul.mubr.msk.bf16.vlgmr.msra.gmra.mrb[52].mxu1 %vm1057_vm2, %v2384_v48 }
0x1328   : > { %3396 = vmatprep.mubr.msk.bf16.mxu1 %vm3630_vm1, %v3629_v13  ;;  %3395 = vmatpush3.bf16.msra.mxu1 %v2499_v0 }
0x13f2   : > { %v2329_v50 = vpop.f32.mrb[48].mxu1 }
0x13f3   : > { %v2335_v51 = vpack.c.bf16 %v2329_v50, %v2329_v50  ;;  %v3374_v52 = vpop.f32.mrb[49].mxu1 }
0x13f4   : > { %v2332_v53 = vpop.f32.mrb[50].mxu1 }
0x13f5   : > { %v3375_v54 = vpop.f32.mrb[51].mxu1  ;;  %3379 = vmatmul.mubr.msk.bf16.vlgmr.msra.gmra.mrb[52].mxu0 %vm1057_vm2, %v2335_v51  ;;  %v3106_v51 = vld [vmem:[%s4330_s30] ss:$0 sm:$0xff] }
0x13f6   : > { %3390 = vmatprep.mubr.msk.bf16.mxu0 %vm3630_vm1, %v3629_v13 }
0x13fa   : > { %v2427_v55 = vpop.f32.mrb[52].mxu1 }
0x13fb   : > { %v2433_v56 = vmul.f32 0.35355338, %v2427_v55  ;;  %v3386_v57 = vpop.f32.mrb[53].mxu1 }
0x13fc   : > { %v2430_v24 = vpop.f32.mrb[54].mxu1  ;;  %v2665_v57 = vlaneseq }
0x13fd   : > { %v3387_v58 = vpop.f32.mrb[55].mxu1  ;;  %v2434_v59 = vsel %vm1057_vm2, %v2433_v56, -inf }
0x13fe   : > { %2435 = vmax.xlane.f32.xlu1 %v2434_v59  ;;  %v2666_v24 = vand.u32 127, %v2665_v57 }
0x148b   : > { %v2436_v60 = vpop.xlane.xlu1 %2435 }
0x148c   : > { %v2437_v4 = vsub.f32 %v2433_v56, %v2436_v60 }
0x148e   : > { %v2438_v61 = vmul.f32 1.442695, %v2437_v4 }
0x1490   : > { %3553 = vpow2.f32 %v2438_v61 }
0x149a   : > { %v3554_v38 = vpop.eup %3553 }
0x149b   : > { %v2440_v62 = vsel %vm1057_vm2, %v3554_v38, 0.0 }
0x149c   : > { %2441 = vadd.xlane.f32.xlu0 %v2440_v62 }
0x14b2   : > { %2446 = vrot.lane.b32.xlu0 %v4090_v46, %s3633_s15 }
0x14c8   : > { %v2376_v1 = vpop.f32.mrb[52].mxu0 }
0x14c9   : > { %v2382_v2 = vadd.f32 %v2376_v1, %v4129_v22  ;;  %v3380_v3 = vpop.f32.mrb[53].mxu0 }
0x14ca   : > { %v2379_v5 = vpop.f32.mrb[54].mxu0 }
0x14cb   : > { %v3381_v7 = vpop.f32.mrb[55].mxu0 }
0x1529   : > { %v2442_v8 = vpop.xlane.xlu0 %2441 }
0x152a   : > { %3555 = vrcp.f32 %v2442_v8 }
0x152d   : > { %v2447_v9 = vpop.permute.xlu0 %2446 }
0x152e   : > { %v2452_v10 = vsel %vm1120_vm3, %v2447_v9, 0 }
0x152f   : > { %3389 = vmatpush3.bf16.msra.mxu0 %v2452_v10 }
0x1534   : > { %v3556_v46 = vpop.eup %3555 }
0x1535   : > { %v2444_v11 = vmul.f32 %v3556_v46, %v3554_v38 }
0x1537   : > { %v2445_v12 = vpack.c.bf16 %v2444_v11, %v2444_v11 }
0x1539   : > { %3391 = vmatmul.mubr.msk.bf16.vlgmr.msra.gmra.mrb[56].mxu0 %vm1057_vm2, %v2445_v12 }
0x153a   : > { %3408 = vmatprep.mubr.msk.f32.mxu0 %vm3630_vm1, %v3629_v13 }
0x160c   : > { %v2488_v15 = vpop.f32.mrb[56].mxu0 }
0x160d   : > { %v2494_v16 = vpack.c.bf16 %v2488_v15, %v2488_v15  ;;  %v3392_v17 = vpop.f32.mrb[57].mxu0 }
0x160e   : > { %v2491_v18 = vpop.f32.mrb[58].mxu0 }
0x160f   : > { %v3393_v19 = vpop.f32.mrb[59].mxu0  ;;  %3397 = vmatmul.mubr.msk.bf16.vlgmr.msra.gmra.mrb[56].mxu1 %vm1057_vm2, %v2494_v16 }
0x16e2   : > { %v2535_v20 = vpop.f32.mrb[56].mxu1 }
0x16e3   : > { %v2541_v22 = vadd.f32 %v2535_v20, %v2382_v2  ;;  %v3398_v23 = vpop.f32.mrb[57].mxu1 }
0x16e4   : > { %v2538_v25 = vpop.f32.mrb[58].mxu1 }
0x16e5   : > { %v2549_v40 = vadd.f32 %v3103_v21, %v2541_v22  ;;  %v3399_v26 = vpop.f32.mrb[59].mxu1 }
0x16e7   : > { %v2550_v27 = vadd.f32 %v2549_v40, %v4047_v30  ;;  %v3634_v30 = vmov 0.0|0.0  }
0x16e8   : > { %3439 = vmatprep.subr.bf16.mxu0 %v3634_v30 }
0x16e9   : > { %v2551_v28 = vsel %vm847_vm0, %v2550_v27, 0.0  ;;  %3441 = vmatpush3.bf16.msra.mxu0 %v3440_v37 }
0x16ea   : > { %2552 = vadd.xlane.f32.xlu1 %v2551_v28  ;;  %3442 = vmatprep.subr.bf16.mxu0 %v3634_v30 }
0x16ed   : > { %3444 = vmatpush3.bf16.msra.mxu0 %v3443_v42 }
0x1777   : > { %v2553_v29 = vpop.xlane.xlu1 %2552 }
0x1778   : > { %v2554_v31 = vmul.f32 0.03125, %v2553_v29 }
0x177a   : > { %v2555_v32 = vsub.f32 %v2550_v27, %v2554_v31 }
0x177c   : > { %v2556_v33 = vmul.f32 %v2555_v32, %v2555_v32 }
0x177e   : > { %v2557_v34 = vsel %vm847_vm0, %v2556_v33, 0.0 }
0x177f   : > { %2558 = vadd.xlane.f32.xlu1 %v2557_v34 }
0x180c   : > { %v2559_v14 = vpop.xlane.xlu1 %2558 }
0x180d   : > { %v2560_v43 = vmul.f32 0.03125, %v2559_v14 }
0x180f   : > { %v2561_v44 = vadd.f32 1e-05, %v2560_v43 }
0x1811   : > { %3557 = vrsqrt.f32 %v2561_v44 }
0x181b   : > { %v3558_v45 = vpop.eup %3557 }
0x181c   : > { %v2563_v48 = vmul.f32 %v3558_v45, %v2555_v32 }
0x181e   : > { %v2571_v49 = vmul.f32 %v3104_v47, %v2563_v48 }
0x1820   : > { %v2579_v50 = vadd.f32 %v3105_v6, %v2571_v49 }
0x1822   : > { %3409 = vmatmul.mubr.msk.f32.vlgmr.msra.gmra.mrb[60].mxu0 %vm847_vm0, %v2579_v50  ;;  %2731 = vst.msk [vmem:[#allocation2] sm:$0xff] %vm847_vm0, %v2579_v50  ;;  %2734 = vst.msk [vmem:[%s3840_s16] sm:$0xff] %vm847_vm0, %v2579_v50 }
0x18f5   : > { %v2660_v52 = vpop.f32.mrb[60].mxu0 }
0x18f6   : > { %v2661_v53 = vadd.f32 %v3106_v51, %v2660_v52  ;;  %v3410_v54 = vpop.f32.mrb[61].mxu0 }
0x18f8   : > { %v2664_v55 = vmax.f32 %v2661_v53, 0.0 }
0x18fa   : > { %v2668_v56 = vsel %vm2667_vm4, %v2664_v55, -inf }
0x18fb   : > { %2669 = vmax.xlane.f32.xlu1 %v2668_v56 }
0x1988   : > { %v2670_v58 = vpop.xlane.xlu1 %2669 }
0x1989   : > { %vm2671_vm5 = vcmp.eq.f32.partialorder %v2664_v55, %v2670_v58 }
0x198a   : > { %v2672_v59 = vsel %vm2671_vm5, %v2666_v24, 4 }
0x198b   : > { %v2673_v60 = vsel %vm2667_vm4, %v2672_v59, 2147483647 }
0x198c   : > { %v2675_v4 = vshra.s32 %v2673_v60, 16  ;;  %v2674_v38 = vand.u32 65535, %v2673_v60 }
0x198e   : > { %v2677_v61 = vcvt.s32.f32 %v2675_v4  ;;  %v2676_v63 = vcvt.s32.f32 %v2674_v38 }
0x1990   : > { %2678 = vmin.xlane.f32.xlu1 %v2677_v61 }
0x1a1d   : > { %v2679_v62 = vpop.xlane.xlu1 %2678 }
0x1a1e   : > { %vm2680_vm6 = vcmp.eq.f32.partialorder %v2677_v61, %v2679_v62  ;;  %v2685_v1 = vcvt.f32.s32 %v2679_v62 }
0x1a1f   : > { %v2681_v0 = vsel %vm2680_vm6, %v2676_v63, inf }
0x1a20   : > { %2682 = vmin.xlane.f32.xlu1 %v2681_v0  ;;  %v2686_v3 = vshll.u32 %v2685_v1, 16 }
0x1aad   : > { %v2683_v2 = vpop.xlane.xlu1 %2682 }
0x1aae   : > { %v2684_v5 = vcvt.f32.s32 %v2683_v2 }
0x1ab0   : > { %v2687_v7 = vadd.s32 %v2686_v3, %v2684_v5 }
0x1ab2   : > { %vm2688_vm7 = vcmp.eq.s32.totalorder %v2666_v24, %v2687_v7 }
0x1ab3   : > { %v3108_v8 = vsel %vm2688_vm7, 1.0, %v3629_v13 }
0x1ab4   : > { %vm2692_vm8 = vcmp.gt.f32.partialorder %v3108_v8, 0.0 }
0x1ab5   : > { %v2693_v9 = vsel %vm2692_vm8, -inf, %v2664_v55 }
0x1ab6   : > { %v2694_v10 = vsel %vm2667_vm4, %v2693_v9, -inf }
0x1ab7   : > { %2695 = vmax.xlane.f32.xlu0 %v2694_v10 }
0x1b44   : > { %v2696_v46 = vpop.xlane.xlu0 %2695 }
0x1b45   : > { %vm2697_vm9 = vcmp.eq.f32.partialorder %v2693_v9, %v2696_v46 }
0x1b46   : > { %v2698_v11 = vsel %vm2697_vm9, %v2666_v24, 4 }
0x1b47   : > { %v2699_v12 = vsel %vm2667_vm4, %v2698_v11, 2147483647 }
0x1b48   : > { %v2701_v15 = vshra.s32 %v2699_v12, 16  ;;  %v2700_v17 = vand.u32 65535, %v2699_v12 }
0x1b4a   : > { %v2703_v16 = vcvt.s32.f32 %v2701_v15  ;;  %v2702_v19 = vcvt.s32.f32 %v2700_v17 }
0x1b4c   : > { %2704 = vmin.xlane.f32.xlu1 %v2703_v16 }
0x1bd9   : > { %v2705_v18 = vpop.xlane.xlu1 %2704 }
0x1bda   : > { %vm2706_vm10 = vcmp.eq.f32.partialorder %v2703_v16, %v2705_v18  ;;  %v2711_v21 = vcvt.f32.s32 %v2705_v18 }
0x1bdb   : > { %v2707_v20 = vsel %vm2706_vm10, %v2702_v19, inf }
0x1bdc   : > { %2708 = vmin.xlane.f32.xlu1 %v2707_v20  ;;  %v2712_v23 = vshll.u32 %v2711_v21, 16 }
0x1c69   : > { %v2709_v22 = vpop.xlane.xlu1 %2708 }
0x1c6a   : > { %v2710_v25 = vcvt.f32.s32 %v2709_v22 }
0x1c6c   : > { %v2713_v40 = vadd.s32 %v2712_v23, %v2710_v25 }
0x1c6e   : > { %vm2714_vm11 = vcmp.eq.s32.totalorder %v2666_v24, %v2713_v40 }
0x1c6f   : > { %v3109_v26 = vsel %vm2714_vm11, 1.0, %v3629_v13 }
0x1c70   : > { %v2717_v27 = vadd.f32 %v3109_v26, %v3108_v8 }
0x1c72   : > { %vm2718_vm12 = vcmp.eq.f32.partialorder %v2717_v27, 0.0 }
0x1c73   : > { %v2719_v28 = vsel %vm2718_vm12, -inf, %v2664_v55 }
0x1c74   : > { %v2720_v29 = vsel %vm2667_vm4, %v2719_v28, -inf }
0x1c75   : > { %2721 = vmax.xlane.f32.xlu1 %v2720_v29 }
0x1d02   : > { %v2722_v31 = vpop.xlane.xlu1 %2721 }
0x1d03   : > { %v2723_v32 = vsub.f32 %v2719_v28, %v2722_v31 }
0x1d05   : > { %v2724_v33 = vmul.f32 1.442695, %v2723_v32 }
0x1d07   : > { %3559 = vpow2.f32 %v2724_v33 }
0x1d11   : > { %v3560_v34 = vpop.eup %3559 }
0x1d12   : > { %v2726_v35 = vsel %vm2667_vm4, %v3560_v34, 0.0 }
0x1d13   : > { %2727 = vadd.xlane.f32.xlu1 %v2726_v35 }
0x1da0   : > { %v2728_v36 = vpop.xlane.xlu1 %2727 }
0x1da1   : > { %3561 = vrcp.f32 %v2728_v36 }
0x1dab   : > { %v3562_v37 = vpop.eup %3561 }
0x1dac   : > { %v2730_v30 = vmul.f32 %v3562_v37, %v3560_v34 }
0x1dae   : > { %v2732_v39 = vmul.f32 %v2730_v30, %v2717_v27 }
0x1db0   : > { %2733 = vst.msk [vmem:[#allocation3] sm:$0xff] %vm2667_vm4, %v2732_v39 }
0x1db1 PF: > { %v3563_v13 = vld [vmem:[%s746_s0] sm:$0xff]   ;;  %v3635_v41 = vmov 0.0   ;;  %v3564_v42 = vld [vmem:[%s746_s0 + $0x8] sm:$0xff]   ;;  %vm3636_vm13 = vmmov 0   ;;  %vm2770_vm14 = vcmask 261120   ;;  %v2736_v52 = vlaneseq }
0x1db2   : > { %3411 = vmatprep.subr.bf16.mxu0 %v3635_v41  ;;  %3419 = vmatprep.subr.bf16.mxu1 %v3635_v41  ;;  %v2735_v14 = vld [vmem:[#allocation2] sm:$0xff]  ;;  %v3566_v45 = vld [vmem:[%s3845_s3 + $0x8] sm:$0xff]   ;;  %v3567_v47 = vld [vmem:[%s3845_s3 + $0x10] sm:$0xff]   ;;  %v2738_v53 = vstv %s3611_s24  ;;  %vm2742_vm15 = vcmask 31744  }
0x1db3   : > { %3412 = vmatpush3.bf16.msra.mxu0 %v3563_v13  ;;  %3415 = vmatprep.mubr.msk.bf16.mxu0 %vm3636_vm13, %v3635_v41  ;;  %v3565_v43 = vld [vmem:[%s3845_s3] sm:$0xff]   ;;  %v2746_v44 = vpack.c.bf16 %v2735_v14, %v2735_v14  ;;  %v3568_v48 = vld [vmem:[%s3845_s3 + $0x18] sm:$0xff]   ;;  %v3570_v49 = vld [vmem:[%s3845_s3 + $0x28] sm:$0xff]   ;;  %v2737_v54 = vand.u32 127, %v2736_v52 }
0x1db4   : > { %3413 = vmatprep.subr.bf16.mxu0 %v3635_v41  ;;  %3435 = vmatprep.mubr.msk.bf16.mxu1 %vm3636_vm13, %v3635_v41  ;;  %v3569_v6 = vld [vmem:[%s3845_s3 + $0x20] sm:$0xff]   ;;  %v3571_v50 = vld [vmem:[%s3845_s3 + $0x30] sm:$0xff]   ;;  %v3572_v51 = vld [vmem:[%s3845_s3 + $0x38] sm:$0xff]  }
0x1db5   : > { %3420 = vmatpush3.bf16.msra.mxu1 %v3565_v43  ;;  %vm2739_vm0 = vcmp.eq.s32.totalorder %v2737_v54, %v2738_v53  ;;  %v3110_v24 = vld [vmem:[%s827_s4] ss:$0 sm:$0xff] }
0x1db6   : > { %3421 = vmatprep.subr.bf16.mxu1 %v3635_v41  ;;  %v3114_v63 = vld [vmem:[%s836_s28] ss:$0 sm:$0xff] }
0x1db7   : > { %3414 = vmatpush3.bf16.msra.mxu0 %v3564_v42  ;;  %v2740_v55 = vld [vmem:[#allocation3] sm:$0xff]  ;;  %v2927_v5 = vld [vmem:[%s3840_s16] sm:$0xff] }
0x1db8   : > { %v2741_v56 = vsel %vm2739_vm0, %v2740_v55, 0.0 }
0x1db9   : > { %3422 = vmatpush3.bf16.msra.mxu1 %v3566_v45  ;;  %v2743_v57 = vsel %vm2742_vm15, %v2741_v56, 0.0 }
0x1dba   : > { %3416 = vmatmul.mubr.msk.bf16.vlgmr.msra.gmra.mrb[0].mxu0 %vm2770_vm14, %v2746_v44  ;;  %3423 = vmatprep.subr.bf16.mxu1 %v3635_v41 }
0x1dbb   : > { %2744 = vadd.xlane.f32.xlu0 %v2743_v57 }
0x1dbd   : > { %3424 = vmatpush3.bf16.msra.mxu1 %v3567_v47 }
0x1dbe   : > { %3425 = vmatprep.subr.bf16.mxu1 %v3635_v41 }
0x1dc1   : > { %3426 = vmatpush3.bf16.msra.mxu1 %v3568_v48 }
0x1dc2   : > { %3427 = vmatprep.subr.bf16.mxu1 %v3635_v41 }
0x1dc5   : > { %3428 = vmatpush3.bf16.msra.mxu1 %v3569_v6 }
0x1dc6   : > { %3429 = vmatprep.subr.bf16.mxu1 %v3635_v41 }
0x1dc9   : > { %3430 = vmatpush3.bf16.msra.mxu1 %v3570_v49 }
0x1dca   : > { %3431 = vmatprep.subr.bf16.mxu1 %v3635_v41 }
0x1dcd   : > { %3432 = vmatpush3.bf16.msra.mxu1 %v3571_v50 }
0x1dce   : > { %3433 = vmatprep.subr.bf16.mxu1 %v3635_v41 }
0x1dd1   : > { %3434 = vmatpush3.bf16.msra.mxu1 %v3572_v51 }
0x1e48   : > { %v2745_v1 = vpop.xlane.xlu0 %2744 }
0x1e8d   : > { %v2808_v58 = vpop.f32.mrb[0].mxu0 }
0x1e8e   : > { %v2809_v59 = vadd.f32 %v3110_v24, %v2808_v58  ;;  %v3417_v60 = vpop.f32.mrb[1].mxu0 }
0x1e8f   : > { %v2811_v4 = vpop.f32.mrb[2].mxu0 }
0x1e90   : > { %v2814_v61 = vmax.f32 %v2809_v59, 0.0  ;;  %v3418_v38 = vpop.f32.mrb[3].mxu0 }
0x1e92   : > { %v2815_v62 = vpack.c.bf16 %v2814_v61, %v2814_v61 }
0x1e94   : > { %3436 = vmatmul.mubr.bf16.vlgmr.msra.gmra.mrb[0].mxu1 %v2815_v62 }
0x1f67   : > { %v2921_v0 = vpop.f32.mrb[0].mxu1 }
0x1f68   : > { %v2922_v2 = vadd.f32 %v3114_v63, %v2921_v0  ;;  %v3437_v3 = vpop.f32.mrb[1].mxu1 }
0x1f69   : > { %v2924_v7 = vpop.f32.mrb[2].mxu1 }
0x1f6a   : > { %v2928_v8 = vmul.f32 %v2922_v2, %v2745_v1  ;;  %v3438_v9 = vpop.f32.mrb[3].mxu1 }
0x1f6c   : > { %v2929_v10 = vadd.f32 %v2928_v8, %v2927_v5 }
0x1f6e   : > { %2930 = vst.msk [vmem:[%s3840_s16] sm:$0xff] %vm2770_vm14, %v2929_v10 }
0x1f6f PF: > { %s4331_s4 = sld [smem:[#allocation8_spill]]  ;;  %s4333_s30 = sld [smem:[#allocation11_spill]] }
0x1f70   : > { %s4334_s24 = sld [smem:[#allocation6_spill]]  ;;  %s4335_s25 = sld [smem:[#allocation7_spill]] }
0x1f71   : > { %s4336_s5 = sld [smem:[#allocation9_spill]]  ;;  %s4337_s1 = sld [smem:[#allocation10_spill]] }
0x1f75   : > { %s33_s26 = sadd.s32 1, %s4331_s4   ;;  %s4332_s4 = sld [smem:[#allocation5_spill]] }
0x1f76   : > { %p30_p0 = scmp.ge.s32.totalorder %s33_s26, 10  }
0x1f78   :  { %32 = sbr.rel (!%p30_p0) target bundleno = 19 (0x13), region = 204 }

</bundles_post_ra>
